<compile_context>
chip_gen: v6e
topology: v6e:2x2x1
jax: 0.10.0
libtpu: 0.0.40
codegen_flags: <defaults>
</compile_context>

<pallas_src>
import functools
import itertools
from functools import reduce
from operator import mul

import numpy as np
import jax
import jax.numpy as jnp
from jax import lax
from jax.experimental import pallas as pl
from jax.experimental.pallas import tpu as pltpu


def _pick_tile(S, cap):
    """Largest tile that divides S, is <= cap, and satisfies the TPU BlockSpec
    lane rule (multiple of 128, or the full extent)."""
    if S <= cap:
        return S
    if S % 128 != 0:
        return S  # must take the full extent
    t = (cap // 128) * 128
    while t >= 128 and S % t != 0:
        t -= 128
    return t if t >= 128 else S


def _st_kernel(vol_ref, df_ref, out_ref, acc_ref, *, H, W, ts_out, ts_in):
    """Bilinear warp, one (batch, out-tile, in-tile) grid step.

    vol_ref: (C, ts_in)   input tile covering flat indices [k*ts_in, (k+1)*ts_in)
    df_ref:  (2, ts_out)  (dy, dx) displacements for the output tile
    out_ref: (C, ts_out)  output tile
    acc_ref: (C, ts_out)  f32 accumulator, resident across the reduction axis
    """
    t = pl.program_id(1)
    k = pl.program_id(2)

    @pl.when(k == 0)
    def _():
        acc_ref[...] = jnp.zeros_like(acc_ref)

    # Output-tile mesh coordinates (flat index -> (y, x)); float math is exact
    # for S < 2**24 (asserted in the wrapper).
    i_f = (lax.broadcasted_iota(jnp.int32, (1, ts_out), 1)
           + t * ts_out).astype(jnp.float32)
    mesh_y = jnp.floor(i_f / W)
    mesh_x = i_f - mesh_y * W

    max_y = float(H - 1)
    max_x = float(W - 1)
    df = df_ref[...]
    loc_y = jnp.clip(mesh_y + df[0:1, :], 0.0, max_y)
    loc_x = jnp.clip(mesh_x + df[1:2, :], 0.0, max_x)

    f0y = jnp.floor(loc_y)
    f0x = jnp.floor(loc_x)
    l0y = jnp.clip(f0y, 0.0, max_y)
    l1y = jnp.clip(f0y + 1.0, 0.0, max_y)
    l0x = jnp.clip(f0x, 0.0, max_x)
    l1x = jnp.clip(f0x + 1.0, 0.0, max_x)

    d1y = jnp.clip(l1y - loc_y, 0.0, 1.0)
    d0y = 1.0 - d1y
    d1x = jnp.clip(l1x - loc_x, 0.0, 1.0)
    d0x = 1.0 - d1x

    # Fused weighted gather matrix for this (in-tile, out-tile) pair.
    # Corner ordering matches itertools.product([0,1], repeat=2) in the torch
    # code: corner code 0 -> loc0 with weight diff_loc1, code 1 -> loc1 with
    # weight diff_loc0.  Corners landing on the same input index ADD their
    # weights, matching the reference's sum over corners.
    base_in = k * ts_in
    row = lax.broadcasted_iota(jnp.int32, (ts_in, ts_out), 0)
    wmat = jnp.zeros((ts_in, ts_out), jnp.float32)
    for sy, wy in ((l0y, d1y), (l1y, d0y)):
        for sx, wx in ((l0x, d1x), (l1x, d0x)):
            idx = (sy * float(W) + sx).astype(jnp.int32) - base_in   # (1, ts_out)
            wmat = wmat + jnp.where(row == idx, wy * wx, 0.0)

    acc_ref[...] += jnp.dot(vol_ref[...], wmat,
                            preferred_element_type=jnp.float32)

    @pl.when(k == pl.num_programs(2) - 1)
    def _():
        out_ref[...] = acc_ref[...].astype(out_ref.dtype)


def spatial_transformer_linear(vol, df, *, ts_out_cap=512, ts_in_cap=1024):
    """vol: (B, C, H, W) float32; df: (B, 2, H, W) float32 -> (B, C, H, W)."""
    B, C, H, W = vol.shape
    S = H * W
    assert S < (1 << 24), "flat spatial size must be < 2**24 for exact f32 index math"
    vol_flat = vol.reshape(B, C, S).astype(jnp.float32)
    df_flat = df.reshape(B, 2, S).astype(jnp.float32)

    ts_out = _pick_tile(S, ts_out_cap)
    ts_in = _pick_tile(S, ts_in_cap)
    n_t = S // ts_out
    n_k = S // ts_in

    kernel = functools.partial(_st_kernel, H=H, W=W, ts_out=ts_out, ts_in=ts_in)

    cost = pl.CostEstimate(
        flops=2 * B * C * S * S,                      # gather-as-matmul MACs
        transcendentals=0,
        bytes_accessed=4 * B * (C * S * n_t           # vol re-read per out tile
                                + 2 * S * n_k         # df re-read per in tile
                                + C * S),             # output
    )

    out = pl.pallas_call(
        kernel,
        out_shape=jax.ShapeDtypeStruct((B, C, S), jnp.float32),
        grid_spec=pltpu.PrefetchScalarGridSpec(
            num_scalar_prefetch=0,
            grid=(B, n_t, n_k),
            in_specs=[
                pl.BlockSpec((None, C, ts_in), lambda b, t, k: (b, 0, k)),
                pl.BlockSpec((None, 2, ts_out), lambda b, t, k: (b, 0, t)),
            ],
            out_specs=pl.BlockSpec((None, C, ts_out), lambda b, t, k: (b, 0, t)),
            scratch_shapes=[pltpu.VMEM((C, ts_out), jnp.float32)],
        ),
        compiler_params=pltpu.CompilerParams(
            dimension_semantics=("parallel", "parallel", "arbitrary")),
        cost_estimate=cost,
    )(vol_flat, df_flat)
    return out.reshape(B, C, H, W)


def reference_np(vol, df):
    """Direct numpy translation of the torch forward (linear, no affine/mesh)."""
    vol = np.asarray(vol, dtype=np.float32)
    df = np.asarray(df, dtype=np.float32)
    B, C, H, W = vol.shape
    max_loc = [H - 1, W - 1]
    yy, xx = np.meshgrid(np.arange(H), np.arange(W), indexing="ij")
    mesh = np.stack([yy, xx]).astype(np.float32)[None]  # (1, 2, H, W)
    loc = [np.clip(mesh[:, d] + df[:, d], 0, m) for d, m in enumerate(max_loc)]
    d_size = [W, 1]
    loc0 = [np.floor(l) for l in loc]
    loc0lst = [np.clip(l, 0, m) for l, m in zip(loc0, max_loc)]
    loc1 = [np.clip(l + 1, 0, m) for l, m in zip(loc0, max_loc)]
    locs = [[f.astype(np.int64) for f in loc0lst],
            [f.astype(np.int64) for f in loc1]]
    diff_loc1 = [np.clip(l1 - l, 0, 1) for l1, l in zip(loc1, loc)]
    diff_loc0 = [1 - d for d in diff_loc1]
    weights_loc = [diff_loc1, diff_loc0]

    out = np.zeros_like(vol)
    vol_flat = vol.reshape(B, C, -1)
    for pt in itertools.product([0, 1], repeat=2):
        subs = [locs[cd][i] for i, cd in enumerate(pt)]
        idx = sum(s * sz for s, sz in zip(subs, d_size))      # (B, H, W)
        idx_flat = idx.reshape(B, -1)
        gathered = np.stack([vol_flat[b][:, idx_flat[b]] for b in range(B)])
        wt = reduce(mul, [weights_loc[cd][i] for i, cd in enumerate(pt)])
        out += wt[:, None] * gathered.reshape(B, C, H, W)
    return out


if __name__ == "__main__":
    key = jax.random.PRNGKey(0)
    k1, k2, k3, k4 = jax.random.split(key, 4)

    # Primary small check (shapes consistent with the module's 2-D use).
    B, C, H, W = 2, 4, 16, 16
    vol = jax.random.normal(k1, (B, C, H, W), dtype=jnp.float32)
    df = 3.0 * jax.random.normal(k2, (B, 2, H, W), dtype=jnp.float32)
    out = jax.block_until_ready(spatial_transformer_linear(vol, df))
    ref = reference_np(np.array(vol), np.array(df))
    assert out.shape == (B, C, H, W)
    assert np.allclose(np.array(out), ref, atol=1e-4, rtol=1e-4), "mismatch (16x16)"

    # Larger spatial size to exercise the multi-tile output and reduction axes.
    B2, C2, H2, W2 = 1, 2, 48, 48
    vol2 = jax.random.normal(k3, (B2, C2, H2, W2), dtype=jnp.float32)
    df2 = 5.0 * jax.random.normal(k4, (B2, 2, H2, W2), dtype=jnp.float32)
    out2 = jax.block_until_ready(spatial_transformer_linear(vol2, df2))
    ref2 = reference_np(np.array(vol2), np.array(df2))
    assert np.allclose(np.array(out2), ref2, atol=1e-4, rtol=1e-4), "mismatch (48x48)"

    print("KERNEL_OK")
</pallas_src>

<mosaic_0001>
module attributes {stable_mosaic.version = 11 : i64} {
  func.func @_st_kernel(%arg0: i32, %arg1: i32, %arg2: i32, %arg3: memref<1x4x256xf32, #tpu.memory_space<vmem>>, %arg4: memref<1x2x256xf32, #tpu.memory_space<vmem>>, %arg5: memref<1x4x256xf32, #tpu.memory_space<vmem>>, %arg6: memref<4x256xf32, #tpu.memory_space<vmem>>) attributes {dimension_semantics = [#tpu.dimension_semantics<parallel>, #tpu.dimension_semantics<parallel>, #tpu.dimension_semantics<arbitrary>], iteration_bounds = array<i64: 2, 1, 1>, scalar_prefetch = 0 : i64, scratch_operands = 1 : i64, tpu.core_type = #tpu.core_type<tc>, window_params = [{transform_indices = @transform_0, window_bounds = array<i64: 1, 4, 256>}, {transform_indices = @transform_1, window_bounds = array<i64: 1, 2, 256>}, {transform_indices = @transform_2, window_bounds = array<i64: 1, 4, 256>}]} {
    %c0_i32 = arith.constant 0 : i32
    %0 = arith.cmpi eq, %arg2, %c0_i32 : i32
    %1 = arith.extui %0 : i1 to i32
    %c0_i32_0 = arith.constant 0 : i32
    %2 = arith.cmpi ne, %1, %c0_i32_0 : i32
    scf.if %2 {
      %cst_44 = arith.constant 0.000000e+00 : f32
      %132 = vector.broadcast %cst_44 : f32 to vector<4x256xf32>
      %c0_45 = arith.constant 0 : index
      %c0_46 = arith.constant 0 : index
      %133 = vector.load %arg6[%c0_45, %c0_46] : memref<4x256xf32, #tpu.memory_space<vmem>>, vector<4x256xf32>
      tpu.vector_store %arg6[%c0_45, %c0_46], %132 {strides = array<i32>} : memref<4x256xf32, #tpu.memory_space<vmem>>, vector<4x256xf32>,
    } else {
    }
    %3 = tpu.iota {dimensions = array<i32: 1>} : vector<1x256xi32>
    %c256_i32 = arith.constant 256 : i32
    %4 = arith.muli %arg1, %c256_i32 : i32
    %5 = vector.broadcast %4 : i32 to vector<1x256xi32>
    %6 = arith.addi %3, %5 : vector<1x256xi32>
    %7 = arith.sitofp %6 : vector<1x256xi32> to vector<1x256xf32>
    %cst = arith.constant 1.600000e+01 : f32
    %8 = vector.broadcast %cst : f32 to vector<1x256xf32>
    %9 = arith.divf %7, %8 : vector<1x256xf32>
    %10 = math.floor %9 : vector<1x256xf32>
    %cst_1 = arith.constant 1.600000e+01 : f32
    %11 = vector.broadcast %cst_1 : f32 to vector<1x256xf32>
    %12 = arith.mulf %10, %11 : vector<1x256xf32>
    %13 = arith.subf %7, %12 : vector<1x256xf32>
    %c0 = arith.constant 0 : index
    %c0_2 = arith.constant 0 : index
    %c0_3 = arith.constant 0 : index
    %14 = vector.load %arg4[%c0, %c0_2, %c0_3] : memref<1x2x256xf32, #tpu.memory_space<vmem>>, vector<1x2x256xf32>
    %15 = vector.shape_cast %14 : vector<1x2x256xf32> to vector<2x256xf32>
    %16 = vector.extract_strided_slice %15 {offsets = [0, 0], sizes = [1, 256], strides = [1, 1]} : vector<2x256xf32> to vector<1x256xf32>
    %17 = arith.addf %10, %16 : vector<1x256xf32>
    %cst_4 = arith.constant 0.000000e+00 : f32
    %cst_5 = arith.constant 1.500000e+01 : f32
    %18 = vector.broadcast %cst_4 : f32 to vector<1x256xf32>
    %19 = arith.maximumf %18, %17 : vector<1x256xf32>
    %20 = vector.broadcast %cst_5 : f32 to vector<1x256xf32>
    %21 = arith.minimumf %20, %19 : vector<1x256xf32>
    %22 = vector.extract_strided_slice %15 {offsets = [1, 0], sizes = [1, 256], strides = [1, 1]} : vector<2x256xf32> to vector<1x256xf32>
    %23 = arith.addf %13, %22 : vector<1x256xf32>
    %cst_6 = arith.constant 0.000000e+00 : f32
    %cst_7 = arith.constant 1.500000e+01 : f32
    %24 = vector.broadcast %cst_6 : f32 to vector<1x256xf32>
    %25 = arith.maximumf %24, %23 : vector<1x256xf32>
    %26 = vector.broadcast %cst_7 : f32 to vector<1x256xf32>
    %27 = arith.minimumf %26, %25 : vector<1x256xf32>
    %28 = math.floor %21 : vector<1x256xf32>
    %29 = math.floor %27 : vector<1x256xf32>
    %cst_8 = arith.constant 0.000000e+00 : f32
    %cst_9 = arith.constant 1.500000e+01 : f32
    %30 = vector.broadcast %cst_8 : f32 to vector<1x256xf32>
    %31 = arith.maximumf %30, %28 : vector<1x256xf32>
    %32 = vector.broadcast %cst_9 : f32 to vector<1x256xf32>
    %33 = arith.minimumf %32, %31 : vector<1x256xf32>
    %cst_10 = arith.constant 1.000000e+00 : f32
    %34 = vector.broadcast %cst_10 : f32 to vector<1x256xf32>
    %35 = arith.addf %28, %34 : vector<1x256xf32>
    %cst_11 = arith.constant 0.000000e+00 : f32
    %cst_12 = arith.constant 1.500000e+01 : f32
    %36 = vector.broadcast %cst_11 : f32 to vector<1x256xf32>
    %37 = arith.maximumf %36, %35 : vector<1x256xf32>
    %38 = vector.broadcast %cst_12 : f32 to vector<1x256xf32>
    %39 = arith.minimumf %38, %37 : vector<1x256xf32>
    %cst_13 = arith.constant 0.000000e+00 : f32
    %cst_14 = arith.constant 1.500000e+01 : f32
    %40 = vector.broadcast %cst_13 : f32 to vector<1x256xf32>
    %41 = arith.maximumf %40, %29 : vector<1x256xf32>
    %42 = vector.broadcast %cst_14 : f32 to vector<1x256xf32>
    %43 = arith.minimumf %42, %41 : vector<1x256xf32>
    %cst_15 = arith.constant 1.000000e+00 : f32
    %44 = vector.broadcast %cst_15 : f32 to vector<1x256xf32>
    %45 = arith.addf %29, %44 : vector<1x256xf32>
    %cst_16 = arith.constant 0.000000e+00 : f32
    %cst_17 = arith.constant 1.500000e+01 : f32
    %46 = vector.broadcast %cst_16 : f32 to vector<1x256xf32>
    %47 = arith.maximumf %46, %45 : vector<1x256xf32>
    %48 = vector.broadcast %cst_17 : f32 to vector<1x256xf32>
    %49 = arith.minimumf %48, %47 : vector<1x256xf32>
    %50 = arith.subf %39, %21 : vector<1x256xf32>
    %cst_18 = arith.constant 0.000000e+00 : f32
    %cst_19 = arith.constant 1.000000e+00 : f32
    %51 = vector.broadcast %cst_18 : f32 to vector<1x256xf32>
    %52 = arith.maximumf %51, %50 : vector<1x256xf32>
    %53 = vector.broadcast %cst_19 : f32 to vector<1x256xf32>
    %54 = arith.minimumf %53, %52 : vector<1x256xf32>
    %cst_20 = arith.constant 1.000000e+00 : f32
    %55 = vector.broadcast %cst_20 : f32 to vector<1x256xf32>
    %56 = arith.subf %55, %54 : vector<1x256xf32>
    %57 = arith.subf %49, %27 : vector<1x256xf32>
    %cst_21 = arith.constant 0.000000e+00 : f32
    %cst_22 = arith.constant 1.000000e+00 : f32
    %58 = vector.broadcast %cst_21 : f32 to vector<1x256xf32>
    %59 = arith.maximumf %58, %57 : vector<1x256xf32>
    %60 = vector.broadcast %cst_22 : f32 to vector<1x256xf32>
    %61 = arith.minimumf %60, %59 : vector<1x256xf32>
    %cst_23 = arith.constant 1.000000e+00 : f32
    %62 = vector.broadcast %cst_23 : f32 to vector<1x256xf32>
    %63 = arith.subf %62, %61 : vector<1x256xf32>
    %c256_i32_24 = arith.constant 256 : i32
    %64 = arith.muli %arg2, %c256_i32_24 : i32
    %65 = tpu.iota {dimensions = array<i32: 0>} : vector<256x256xi32>
    %cst_25 = arith.constant 0.000000e+00 : f32
    %66 = vector.broadcast %cst_25 : f32 to vector<256x256xf32>
    %cst_26 = arith.constant 1.600000e+01 : f32
    %67 = vector.broadcast %cst_26 : f32 to vector<1x256xf32>
    %68 = arith.mulf %33, %67 : vector<1x256xf32>
    %69 = arith.addf %68, %43 : vector<1x256xf32>
    %70 = arith.fptosi %69 : vector<1x256xf32> to vector<1x256xi32>
    %71 = vector.broadcast %64 : i32 to vector<1x256xi32>
    %72 = arith.subi %70, %71 : vector<1x256xi32>
    %73 = vector.broadcast %72 : vector<1x256xi32> to vector<256x256xi32>
    %74 = arith.cmpi eq, %65, %73 : vector<256x256xi32>
    %75 = arith.mulf %54, %61 : vector<1x256xf32>
    %cst_27 = arith.constant 0.000000e+00 : f32
    %76 = vector.shape_cast %75 : vector<1x256xf32> to vector<1x256xf32>
    %77 = vector.broadcast %76 : vector<1x256xf32> to vector<256x256xf32>
    %78 = vector.broadcast %cst_27 : f32 to vector<256x256xf32>
    %79 = arith.select %74, %77, %78 : vector<256x256xi1>, vector<256x256xf32>
    %80 = arith.addf %66, %79 : vector<256x256xf32>
    %cst_28 = arith.constant 1.600000e+01 : f32
    %81 = vector.broadcast %cst_28 : f32 to vector<1x256xf32>
    %82 = arith.mulf %33, %81 : vector<1x256xf32>
    %83 = arith.addf %82, %49 : vector<1x256xf32>
    %84 = arith.fptosi %83 : vector<1x256xf32> to vector<1x256xi32>
    %85 = vector.broadcast %64 : i32 to vector<1x256xi32>
    %86 = arith.subi %84, %85 : vector<1x256xi32>
    %87 = vector.broadcast %86 : vector<1x256xi32> to vector<256x256xi32>
    %88 = arith.cmpi eq, %65, %87 : vector<256x256xi32>
    %89 = arith.mulf %54, %63 : vector<1x256xf32>
    %cst_29 = arith.constant 0.000000e+00 : f32
    %90 = vector.shape_cast %89 : vector<1x256xf32> to vector<1x256xf32>
    %91 = vector.broadcast %90 : vector<1x256xf32> to vector<256x256xf32>
    %92 = vector.broadcast %cst_29 : f32 to vector<256x256xf32>
    %93 = arith.select %88, %91, %92 : vector<256x256xi1>, vector<256x256xf32>
    %94 = arith.addf %80, %93 : vector<256x256xf32>
    %cst_30 = arith.constant 1.600000e+01 : f32
    %95 = vector.broadcast %cst_30 : f32 to vector<1x256xf32>
    %96 = arith.mulf %39, %95 : vector<1x256xf32>
    %97 = arith.addf %96, %43 : vector<1x256xf32>
    %98 = arith.fptosi %97 : vector<1x256xf32> to vector<1x256xi32>
    %99 = vector.broadcast %64 : i32 to vector<1x256xi32>
    %100 = arith.subi %98, %99 : vector<1x256xi32>
    %101 = vector.broadcast %100 : vector<1x256xi32> to vector<256x256xi32>
    %102 = arith.cmpi eq, %65, %101 : vector<256x256xi32>
    %103 = arith.mulf %56, %61 : vector<1x256xf32>
    %cst_31 = arith.constant 0.000000e+00 : f32
    %104 = vector.shape_cast %103 : vector<1x256xf32> to vector<1x256xf32>
    %105 = vector.broadcast %104 : vector<1x256xf32> to vector<256x256xf32>
    %106 = vector.broadcast %cst_31 : f32 to vector<256x256xf32>
    %107 = arith.select %102, %105, %106 : vector<256x256xi1>, vector<256x256xf32>
    %108 = arith.addf %94, %107 : vector<256x256xf32>
    %cst_32 = arith.constant 1.600000e+01 : f32
    %109 = vector.broadcast %cst_32 : f32 to vector<1x256xf32>
    %110 = arith.mulf %39, %109 : vector<1x256xf32>
    %111 = arith.addf %110, %49 : vector<1x256xf32>
    %112 = arith.fptosi %111 : vector<1x256xf32> to vector<1x256xi32>
    %113 = vector.broadcast %64 : i32 to vector<1x256xi32>
    %114 = arith.subi %112, %113 : vector<1x256xi32>
    %115 = vector.broadcast %114 : vector<1x256xi32> to vector<256x256xi32>
    %116 = arith.cmpi eq, %65, %115 : vector<256x256xi32>
    %117 = arith.mulf %56, %63 : vector<1x256xf32>
    %cst_33 = arith.constant 0.000000e+00 : f32
    %118 = vector.shape_cast %117 : vector<1x256xf32> to vector<1x256xf32>
    %119 = vector.broadcast %118 : vector<1x256xf32> to vector<256x256xf32>
    %120 = vector.broadcast %cst_33 : f32 to vector<256x256xf32>
    %121 = arith.select %116, %119, %120 : vector<256x256xi1>, vector<256x256xf32>
    %122 = arith.addf %108, %121 : vector<256x256xf32>
    %c0_34 = arith.constant 0 : index
    %c0_35 = arith.constant 0 : index
    %123 = vector.load %arg6[%c0_34, %c0_35] : memref<4x256xf32, #tpu.memory_space<vmem>>, vector<4x256xf32>
    %c0_36 = arith.constant 0 : index
    %c0_37 = arith.constant 0 : index
    %c0_38 = arith.constant 0 : index
    %124 = vector.load %arg3[%c0_36, %c0_37, %c0_38] : memref<1x4x256xf32, #tpu.memory_space<vmem>>, vector<1x4x256xf32>
    %125 = vector.shape_cast %124 : vector<1x4x256xf32> to vector<4x256xf32>
    %cst_39 = arith.constant dense<0.000000e+00> : vector<4x256xf32>
    %126 = tpu.matmul %125, %122, %cst_39 {dimension_numbers = #tpu.dot_dimension_numbers<[1], [0], [0], [1], [0, 0, 1, 1], [], []>} : vector<4x256xf32>, vector<256x256xf32>, vector<4x256xf32> -> vector<4x256xf32>
    %127 = arith.addf %123, %126 : vector<4x256xf32>
    %c0_40 = arith.constant 0 : index
    %c0_41 = arith.constant 0 : index
    %128 = vector.load %arg6[%c0_40, %c0_41] : memref<4x256xf32, #tpu.memory_space<vmem>>, vector<4x256xf32>
    tpu.vector_store %arg6[%c0_40, %c0_41], %127 {strides = array<i32>} : memref<4x256xf32, #tpu.memory_space<vmem>>, vector<4x256xf32>,
    %c0_i32_42 = arith.constant 0 : i32
    %129 = arith.cmpi eq, %arg2, %c0_i32_42 : i32
    %130 = arith.extui %129 : i1 to i32
    %c0_i32_43 = arith.constant 0 : i32
    %131 = arith.cmpi ne, %130, %c0_i32_43 : i32
    scf.if %131 {
      %c0_44 = arith.constant 0 : index
      %c0_45 = arith.constant 0 : index
      %132 = vector.load %arg6[%c0_44, %c0_45] : memref<4x256xf32, #tpu.memory_space<vmem>>, vector<4x256xf32>
      %c0_46 = arith.constant 0 : index
      %c0_47 = arith.constant 0 : index
      %c0_48 = arith.constant 0 : index
      %133 = vector.load %arg5[%c0_46, %c0_47, %c0_48] : memref<1x4x256xf32, #tpu.memory_space<vmem>>, vector<1x4x256xf32>
      %134 = vector.shape_cast %133 : vector<1x4x256xf32> to vector<4x256xf32>
      %135 = vector.shape_cast %132 : vector<4x256xf32> to vector<1x4x256xf32>
      tpu.vector_store %arg5[%c0_46, %c0_47, %c0_48], %135 {strides = array<i32>} : memref<1x4x256xf32, #tpu.memory_space<vmem>>, vector<1x4x256xf32>,
    } else {
    }
    return
  }
  func.func @transform_0(%arg0: i32, %arg1: i32, %arg2: i32) -> (i32, i32, i32) {
    %c0_i32 = arith.constant 0 : i32
    %c0_i32_0 = arith.constant 0 : i32
    return %arg0, %c0_i32, %arg2 : i32, i32, i32
  }
  func.func @transform_1(%arg0: i32, %arg1: i32, %arg2: i32) -> (i32, i32, i32) {
    %c0_i32 = arith.constant 0 : i32
    %c0_i32_0 = arith.constant 0 : i32
    return %arg0, %c0_i32, %arg1 : i32, i32, i32
  }
  func.func @transform_2(%arg0: i32, %arg1: i32, %arg2: i32) -> (i32, i32, i32) {
    %c0_i32 = arith.constant 0 : i32
    %c0_i32_0 = arith.constant 0 : i32
    return %arg0, %c0_i32, %arg1 : i32, i32, i32
  }
}

</mosaic_0001>

<bundles_post_ra>
// kernel: tpu_custom_call.1
= control target key start
LH: loop header
LB: loop body
LE: loop exit
PB: predicated region body
PF: predicated region fallthrough
CT: control target
= control target key end

     0   :  { %7 = vsyncpa [#allocation4], 0  ;;  %s2742_s0 = inlined_call_operand.hbm [shape: f32[2,4,256], index: 0, kind: input, shape index: {}]   ;;  %s2743_s1 = inlined_call_operand.hbm [shape: f32[2,2,256], index: 1, kind: input, shape index: {}]   ;;  %s2744_s2 = inlined_call_operand.hbm [shape: f32[2,4,256], index: 2, kind: output, shape index: {}]  }
   0x1   :  { %9 = vsyncpa [#allocation4 + $0x1], 0 }
   0x2   :  { %10 = vsyncpa [#allocation7], 0 }
   0x3   :  { %12 = vsyncpa [#allocation7 + $0x1], 0 }
   0x4   :  { %13 = vsyncpa [#allocation5], 0 }
   0x5   :  { %15 = vsyncpa [#allocation5 + $0x1], 0  ;;  %s1713_s9 = smov 0   ;;  %s1715_s10 = smov 0  }
   0x6   :  { %s1717_s11 = smov 0   ;;  %s1719_s12 = smov 0  }
   0x7   :  { %s1721_s13 = smov 0   ;;  %s1723_s14 = smov 0  }
   0x8 LB: > { %s1447_s15 = sadd.s32 4294967295, %s1693_s14   ;;  %s1448_s16 = sadd.s32 4294967294, %s1693_s14   ;;  %s1693_s14 = sphi %s1723_s14, %s21_s14   ;;  %s1689_s13 = sphi %s1721_s13, %s2756_s13   ;;  %s1685_s12 = sphi %s1719_s12, %s2755_s12   ;;  %s1681_s11 = sphi %s1717_s11, %s2754_s11   ;;  %s1677_s10 = sphi %s1715_s10, %s2753_s10   ;;  %s1673_s9 = sphi %s1713_s9, %s2752_s9  }
   0x9   : > { %s40_s17 = sadd.s32 1, %s1689_s13  ;;  %s49_s18 = sadd.s32 1, %s1681_s11 }
   0xa   : > { %p42_p0 = scmp.ge.s32.totalorder %s40_s17, 2  ;;  %p56_p1 = scmp.ne.s32.totalorder %s1681_s11, %s1677_s10 }
   0xb   : > { %p57_p2 = scmp.eq.s32.totalorder %s1693_s14, 0  ;;  %p62_p3 = scmp.ne.s32.totalorder %s1677_s10, %s1673_s9 }
   0xc   : > { %s2758_s17 = smov (%p42_p0, %s40_s17), 0  ;;  %p63_p5 = scmp.eq.s32.totalorder %s1447_s15, 0 }
   0xd   : > { %p1754_p4 = por %p57_p2, %p56_p1  ;;  %s44_s20 = ssub.s32 %s1689_s13, %s2758_s17 }
   0xe   : > { %p116_p6 = scmp.eq.s32.totalorder %s1447_s15, 1  ;;  %p47_p7 = scmp.eq.s32.totalorder %s44_s20, 0 }
   0xf   : > { %p1760_p8 = por %p63_p5, %p62_p3  ;;  %p122_p10 = scmp.eq.s32.totalorder %s1448_s16, 1 }
  0x10   : > { %p1764_p9 = por %p116_p6, %p56_p1  ;;  %p1502_p13 = scmp.lt.s32.totalorder %s1693_s14, 2 }
  0x11   : > { %s1769_s23 = scalar_select %p47_p7, %s1681_s11, %s49_s18  }
  0x12   : > { %p1771_p11 = por %p122_p10, %p62_p3  ;;  %s1778_s25 = sand.u32 1, %s1681_s11  }
  0x13   : > { %s1451_s26 = sshll.u32 %s1778_s25, 3  ;;  %s1466_s27 = sshll.u32 %s1689_s13, 7 }
  0x14   : > { %s154_s30 = scalar_lea.hbm %s2742_s0, %s1466_s27  ;;  %s146_s3 = scalar_lea.vmem [#allocation3], %s1451_s26 }
  0x15   : > { %s156_s4 = sshll.u32 %s146_s3, 4  ;;  %p1787_p0 = pnand %p1502_p13, %p1754_p4  ;;  %s157_s4 = int_to_ptr.vmem [resolvable:$true] %s156_s4 }
  0x16   : > { %p1457_p1 = scmp.ge.s32.totalorder %s1693_s14, 1  ;;  %p182_p2 = scmp.lt.s32.totalorder %s1693_s14, 3 }
  0x17   : > { %s143_s6 = scalar_lea.sflag [#allocation4], %s1778_s25  ;;  %p1555_p3 = pneg %p1787_p0 }
  0x18   : > { %s1566_s7 = scalar_lea.vmem %s157_s4, 128  ;;  %s1695_s8 = smov [#allocation3]  }
  0x19   : > { %p1567_p5 = scmp.ne.s32.totalorder %s157_s4, %s1566_s7  ;;  %s1571_s15 = sshll.u32 %s1695_s8, 4  ;;  %s1572_s15 = int_to_ptr.vmem [resolvable:$false] %s1571_s15 }
  0x1a   : > { %s1573_s16 = scalar_lea.vmem %s1572_s15, 256  ;;  %p1574_p4 = scmp.lt.s32.totalorder %s157_s4, %s1572_s15 }
  0x1b   : > { %p1569_p6 = pnand %p1567_p5, %p1555_p3  ;;  %p1575_p10 = scmp.lt.s32.totalorder %s1573_s16, %s1566_s7 }
  0x1d   : > { %p1570_p7 = pneg %p1569_p6  ;;  %p1576_p13 = por %p1575_p10, %p1574_p4 }
  0x1f   : > { %p1577_p12 = pnand %p1576_p13, %p1570_p7 }
  0x21   : > { %1580 = shalt.err (!%p1577_p12)
}
  0x22   : > { %1494 = dma.hbm_to_vmem [thread:$0]  (!%p1787_p0), %s154_s30, 128, %s157_s4, %s143_s6  }
  0x23   : > { %p1805_p5 = pnand %p1457_p1, %p182_p2  ;;  %s1454_s19 = sshll.u32 %s1778_s25, 2 }
  0x24   : > { %s1467_s20 = sshll.u32 %s1689_s13, 6  ;;  %s167_s29 = scalar_lea.vmem [#allocation6], %s1454_s19 }
  0x25   : > { %s175_s28 = scalar_lea.hbm %s2743_s1, %s1467_s20  ;;  %s177_s3 = sshll.u32 %s167_s29, 4  ;;  %s178_s3 = int_to_ptr.vmem [resolvable:$true] %s177_s3 }
  0x26   : > { %s164_s7 = scalar_lea.sflag [#allocation7], %s1778_s25  ;;  %s1594_s8 = scalar_lea.vmem %s178_s3, 64 }
  0x27   : > { %p1595_p12 = scmp.ne.s32.totalorder %s178_s3, %s1594_s8  ;;  %s1696_s30 = smov [#allocation6]  }
  0x28   : > { %s1599_s4 = sshll.u32 %s1696_s30, 4  ;;  %s1600_s4 = int_to_ptr.vmem [resolvable:$false] %s1599_s4 }
  0x29   : > { %p1597_p6 = pnand %p1595_p12, %p1555_p3  ;;  %s1601_s6 = scalar_lea.vmem %s1600_s4, 128 }
  0x2a   : > { %p1602_p1 = scmp.lt.s32.totalorder %s178_s3, %s1600_s4  ;;  %p1603_p2 = scmp.lt.s32.totalorder %s1601_s6, %s1594_s8 }
  0x2b   : > { %p1598_p7 = pneg %p1597_p6 }
  0x2c   : > { %p1604_p4 = por %p1603_p2, %p1602_p1 }
  0x2e   : > { %p1605_p10 = pnand %p1604_p4, %p1598_p7 }
  0x30   : > { %1608 = shalt.err (!%p1605_p10)
}
  0x31   : > { %1497 = dma.hbm_to_vmem [thread:$0]  (!%p1787_p0), %s175_s28, 64, %s178_s3, %s164_s7  }
  0x32   : > { %186 = sbr.rel (%p1805_p5) target bundleno = 497 (0x1f1), region = 28  ;;  %s1823_s25 = sand.u32 (!%p1805_p5), 1, %s1677_s10  }
  0x33   : > { %s1458_s15 = sshll.u32 (!%p1805_p5), %s1823_s25, 3  ;;  %s189_s16 = scalar_lea.sflag (!%p1805_p5), [#allocation4], %s1823_s25 }
  0x34   : > { %s1829_s19 = scalar_lea.vmem (!%p1805_p5), [#allocation3], %s1458_s15 }
  0x37   : > { %1660 = dma.done.wait (%p1760_p8), %s189_s16, 128  }
  0x38   : > { %1662 = vsyncadd (%p1760_p8), %s189_s16, 4294967168  ;;  %s1459_s5 = sshll.u32 %s1823_s25, 2  ;;  %s198_s18 = scalar_lea.sflag [#allocation7], %s1823_s25 }
  0x39   : > { %s201_s20 = scalar_lea.vmem [#allocation6], %s1459_s5 }
  0x3a   : > { %1664 = dma.done.wait (%p1760_p8), %s198_s18, 64  }
  0x3b   : > { %1666 = vsyncadd (%p1760_p8), %s198_s18, 4294967232  ;;  %v235_v0 = vlaneseq  ;;  %v253_v10 = vld [vmem:[%s201_s20] sm:$0xf]  ;;  %s1468_s21 = sshll.u32 %s1685_s12, 7  ;;  %s226_s26 = scalar_lea.vmem [#allocation8], %s1458_s15 }
  0x3c   : > { %s1334_s27 = sshll.u32 %s226_s26, 4  ;;  %s1332_s3 = scalar_lea.hbm %s2744_s2, %s1468_s21  ;;  %s1335_s27 = int_to_ptr.vmem [resolvable:$true] %s1334_s27 }
  0x3d   : > { %v236_v1 = vand.u32 127, %v235_v0  ;;  %v1841_v2 = vshrl.u32 %v235_v0, 7  ;;  %s1318_s7 = scalar_lea.sflag [#allocation5], %s1823_s25  ;;  %s1609_s8 = scalar_lea.vmem %s1335_s27, 128 }
  0x3e   : > { %p1610_p8 = scmp.ne.s32.totalorder %s1335_s27, %s1609_s8  ;;  %s1697_s30 = smov [#allocation8]  }
  0x3f   : > { %v237_v3 = vadd.s32 128, %v236_v1  ;;  %v242_v4 = vcvt.s32.f32 %v236_v1  ;;  %v1844_v5 = vsub.s32 0, %v1841_v2  ;;  %v261_v6 = vsub.s32 2, %v1841_v2  ;;  %s1613_s4 = sshll.u32 %s1697_s30, 4  ;;  %s1614_s4 = int_to_ptr.vmem [resolvable:$false] %s1613_s4 }
  0x40   : > { %v273_v9 = vsub.s32 1, %v1841_v2  ;;  %v277_v11 = vsub.s32 3, %v1841_v2  ;;  %v1851_v21 = vadd.s32 120, %v1841_v2  ;;  %v1854_v22 = vadd.s32 112, %v1841_v2  ;;  %p1611_p0 = pnand %p1610_p8, %p1764_p9  ;;  %s1615_s12 = scalar_lea.vmem %s1614_s4, 256 }
  0x41   : > { %v243_v7 = vcvt.s32.f32 %v237_v3  ;;  %v245_v8 = vmul.f32 0.0625, %v242_v4  ;;  %v258_v14 = vrot.slane %v253_v10, %v1844_v5  ;;  %v262_v15 = vrot.slane %v253_v10, %v261_v6  ;;  %p1616_p13 = scmp.lt.s32.totalorder %s1335_s27, %s1614_s4  ;;  %p1617_p5 = scmp.lt.s32.totalorder %s1615_s12, %s1609_s8 }
  0x42   : > { %v274_v19 = vrot.slane %v253_v10, %v273_v9  ;;  %v278_v20 = vrot.slane %v253_v10, %v277_v11  ;;  %v1857_v27 = vadd.s32 104, %v1841_v2  ;;  %v1860_v28 = vadd.s32 96, %v1841_v2  ;;  %p1612_p3 = pneg %p1611_p0 }
  0x43   : > { %v246_v12 = vmul.f32 0.0625, %v243_v7  ;;  %v247_v13 = vfloor.f32 %v245_v8  ;;  %v1863_v29 = vadd.s32 88, %v1841_v2  ;;  %v1866_v30 = vadd.s32 80, %v1841_v2  ;;  %p1618_p12 = por %p1617_p5, %p1616_p13 }
  0x44   : > { %v1869_v35 = vadd.s32 72, %v1841_v2  ;;  %v1872_v36 = vadd.s32 64, %v1841_v2  ;;  %v1875_v37 = vadd.s32 56, %v1841_v2  ;;  %v1878_v38 = vadd.s32 48, %v1841_v2 }
  0x45   : > { %v248_v16 = vfloor.f32 %v246_v12  ;;  %v249_v17 = vmul.f32 16.0, %v247_v13  ;;  %v265_v18 = vadd.f32 %v258_v14, %v247_v13  ;;  %v1881_v43 = vadd.s32 40, %v1841_v2  ;;  %p1619_p6 = pnand %p1618_p12, %p1612_p3 }
  0x46   : > { %v1884_v44 = vadd.s32 32, %v1841_v2  ;;  %v1887_v45 = vadd.s32 24, %v1841_v2  ;;  %v1890_v46 = vadd.s32 16, %v1841_v2  ;;  %v1893_v52 = vadd.s32 8, %v1841_v2 }
  0x47   : > { %v250_v23 = vmul.f32 16.0, %v248_v16  ;;  %v251_v24 = vsub.f32 %v242_v4, %v249_v17  ;;  %v266_v25 = vadd.f32 %v262_v15, %v248_v16  ;;  %v267_v26 = vmax.f32 %v265_v18, 0.0 }
  0x48   : > { %v1896_v53 = vadd.s32 248, %v1841_v2  ;;  %v1899_v54 = vadd.s32 240, %v1841_v2  ;;  %v1902_v61 = vadd.s32 232, %v1841_v2  ;;  %v1905_v62 = vadd.s32 224, %v1841_v2 }
  0x49   : > { %v252_v31 = vsub.f32 %v243_v7, %v250_v23  ;;  %v268_v32 = vmax.f32 %v266_v25, 0.0  ;;  %v269_v33 = vmin.f32 %v267_v26, 15.0  ;;  %v281_v34 = vadd.f32 %v274_v19, %v251_v24 }
  0x4a   : > { %v1908_v8 = vadd.s32 216, %v1841_v2 }
  0x4b   : > { %v270_v39 = vmin.f32 %v268_v32, 15.0  ;;  %v282_v40 = vadd.f32 %v278_v20, %v252_v31  ;;  %v283_v41 = vmax.f32 %v281_v34, 0.0  ;;  %v287_v42 = vfloor.f32 %v269_v33 }
  0x4d   : > { %v284_v47 = vmax.f32 %v282_v40, 0.0  ;;  %v285_v48 = vmin.f32 %v283_v41, 15.0  ;;  %v288_v49 = vfloor.f32 %v270_v39  ;;  %v291_v50 = vmax.f32 %v287_v42, 0.0 }
  0x4e   : > { %v295_v51 = vadd.f32 1.0, %v287_v42 }
  0x4f   : > { %v286_v55 = vmin.f32 %v284_v47, 15.0  ;;  %v289_v56 = vfloor.f32 %v285_v48  ;;  %v292_v57 = vmax.f32 %v288_v49, 0.0  ;;  %v293_v58 = vmin.f32 %v291_v50, 15.0 }
  0x50   : > { %v296_v59 = vadd.f32 1.0, %v288_v49  ;;  %v297_v60 = vmax.f32 %v295_v51, 0.0 }
  0x51   : > { %v290_v63 = vfloor.f32 %v286_v55  ;;  %v294_v0 = vmin.f32 %v292_v57, 15.0  ;;  %v301_v1 = vmax.f32 %v289_v56, 0.0  ;;  %v305_v3 = vadd.f32 1.0, %v289_v56 }
  0x52   : > { %v298_v4 = vmax.f32 %v296_v59, 0.0  ;;  %v299_v6 = vmin.f32 %v297_v60, 15.0  ;;  %v361_v7 = vmul.f32 16.0, %v293_v58 }
  0x53   : > { %v302_v9 = vmax.f32 %v290_v63, 0.0  ;;  %v303_v10 = vmin.f32 %v301_v1, 15.0  ;;  %v306_v11 = vadd.f32 1.0, %v290_v63  ;;  %v307_v12 = vmax.f32 %v305_v3, 0.0 }
  0x54   : > { %v300_v13 = vmin.f32 %v298_v4, 15.0  ;;  %v311_v14 = vsub.f32 %v299_v6, %v269_v33  ;;  %v362_v15 = vmul.f32 16.0, %v294_v0  ;;  %v796_v16 = vmul.f32 16.0, %v299_v6 }
  0x55   : > { %v304_v17 = vmin.f32 %v302_v9, 15.0  ;;  %v308_v18 = vmax.f32 %v306_v11, 0.0  ;;  %v309_v19 = vmin.f32 %v307_v12, 15.0  ;;  %v363_v20 = vadd.f32 %v361_v7, %v303_v10 }
  0x56   : > { %v312_v23 = vsub.f32 %v300_v13, %v270_v39  ;;  %v313_v24 = vmax.f32 %v311_v14, 0.0  ;;  %v797_v25 = vmul.f32 16.0, %v300_v13  ;;  %v798_v26 = vadd.f32 %v796_v16, %v303_v10 }
  0x57   : > { %v310_v31 = vmin.f32 %v308_v18, 15.0  ;;  %v319_v32 = vsub.f32 %v309_v19, %v285_v48  ;;  %v364_v34 = vadd.f32 %v362_v15, %v304_v17  ;;  %v1469_v40 = vtrunc.f32 %v363_v20 }
  0x58   : > { %v314_v41 = vmax.f32 %v312_v23, 0.0  ;;  %v315_v42 = vmin.f32 %v313_v24, 1.0  ;;  %v580_v47 = vadd.f32 %v361_v7, %v309_v19  ;;  %v799_v49 = vadd.f32 %v797_v25, %v304_v17 }
  0x59   : > { %v320_v50 = vsub.f32 %v310_v31, %v286_v55  ;;  %v321_v33 = vmax.f32 %v319_v32, 0.0  ;;  %v1470_v51 = vcvt.f32.s32 %v1469_v40  ;;  %v1471_v56 = vtrunc.f32 %v364_v34 }
  0x5a   : > { %v316_v57 = vmin.f32 %v314_v41, 1.0  ;;  %v317_v58 = vsub.f32 1.0, %v315_v42  ;;  %v581_v59 = vadd.f32 %v362_v15, %v310_v31  ;;  %v1473_v60 = vtrunc.f32 %v580_v47 }
  0x5b   : > { %v322_v39 = vmax.f32 %v320_v50, 0.0  ;;  %v323_v63 = vmin.f32 %v321_v33, 1.0  ;;  %v1472_v0 = vcvt.f32.s32 %v1471_v56  ;;  %v1911_v1 = vrot.slane %v1470_v51, %v1844_v5 }
  0x5c   : > { %v318_v48 = vsub.f32 1.0, %v316_v57  ;;  %v1474_v3 = vcvt.f32.s32 %v1473_v60  ;;  %v1475_v4 = vtrunc.f32 %v581_v59  ;;  %v1477_v6 = vtrunc.f32 %v798_v26 }
  0x5d   : > { %v324_v7 = vmin.f32 %v322_v39, 1.0  ;;  %v325_v9 = vsub.f32 1.0, %v323_v63  ;;  %v1914_v55 = vrot.slane %v1472_v0, %v1844_v5  ;;  %v442_v10 = vmul.f32 %v323_v63, %v315_v42 }
  0x5e   : > { %v1476_v11 = vcvt.f32.s32 %v1475_v4  ;;  %v1917_v12 = vrot.slane %v1474_v3, %v1844_v5  ;;  %v1478_v13 = vcvt.f32.s32 %v1477_v6  ;;  %v1479_v14 = vtrunc.f32 %v799_v49 }
  0x5f   : > { %v326_v15 = vsub.f32 1.0, %v324_v7  ;;  %v443_v17 = vmul.f32 %v324_v7, %v316_v57  ;;  %v1920_v18 = vrot.slane %v442_v10, %v1844_v5  ;;  %v658_v20 = vmul.f32 %v325_v9, %v315_v42 }
  0x60   : > { %v1923_v23 = vrot.slane %v1476_v11, %v1844_v5  ;;  %v1480_v24 = vcvt.f32.s32 %v1479_v14  ;;  %v1926_v26 = vrot.slane %v1478_v13, %v1844_v5  ;;  %v876_v32 = vmul.f32 %v323_v63, %v317_v58 }
  0x61   : > { %v1929_v34 = vrot.slane %v443_v17, %v1844_v5  ;;  %v659_v40 = vmul.f32 %v326_v15, %v316_v57  ;;  %v1932_v41 = vrot.slane %v658_v20, %v1844_v5  ;;  %v877_v47 = vmul.f32 %v324_v7, %v318_v48 }
  0x62   : > { %v1935_v49 = vrot.slane %v1480_v24, %v1844_v5  ;;  %v1938_v42 = vrot.slane %v876_v32, %v1844_v5  ;;  %v1014_v50 = vadd.f32 %v796_v16, %v309_v19  ;;  %v1015_v33 = vadd.f32 %v797_v25, %v310_v31 }
  0x63   : > { %v1941_v51 = vrot.slane %v659_v40, %v1844_v5  ;;  %v1944_v56 = vrot.slane %v877_v47, %v1844_v5  ;;  %v1092_v59 = vmul.f32 %v325_v9, %v317_v58  ;;  %v1093_v57 = vmul.f32 %v326_v15, %v318_v48 }
  0x64   : > { %v1481_v60 = vtrunc.f32 %v1014_v50  ;;  %v1483_v39 = vtrunc.f32 %v1015_v33  ;;  %vm409_vm0 = vcmp.eq.s32.totalorder %v1851_v21, %v1914_v55  ;;  %vm625_vm1 = vcmp.eq.s32.totalorder %v1851_v21, %v1923_v23 }
  0x65   : > { %v1951_v63 = vrot.slane %v1092_v59, %v1844_v5  ;;  %v1954_v16 = vrot.slane %v1093_v57, %v1844_v5  ;;  %v483_v19 = vsel %vm409_vm0, %v1929_v34, 0.0  ;;  %v699_v25 = vsel %vm625_vm1, %v1941_v51, 0.0 }
  0x66   : > { %v1482_v31 = vcvt.f32.s32 %v1481_v60  ;;  %v1484_v58 = vcvt.f32.s32 %v1483_v39  ;;  %v763_v0 = vadd.f32 %v699_v25, %v483_v19  ;;  %vm843_vm2 = vcmp.eq.s32.totalorder %v1851_v21, %v1935_v49 }
  0x67   : > { %v917_v48 = vsel %vm843_vm2, %v1944_v56, 0.0  ;;  %vm408_vm3 = vcmp.eq.s32.totalorder %v1851_v21, %v1911_v1  ;;  %vm624_vm4 = vcmp.eq.s32.totalorder %v1851_v21, %v1917_v12  ;;  %vm842_vm5 = vcmp.eq.s32.totalorder %v1851_v21, %v1926_v26 }
  0x68   : > { %v1968_v3 = vrot.slane %v1482_v31, %v1844_v5  ;;  %v1971_v4 = vrot.slane %v1484_v58, %v1844_v5  ;;  %v981_v6 = vadd.f32 %v917_v48, %v763_v0  ;;  %v482_v7 = vsel %vm408_vm3, %v1920_v18, 0.0 }
  0x69   : > { %v698_v9 = vsel %vm624_vm4, %v1932_v41, 0.0  ;;  %v916_v10 = vsel %vm842_vm5, %v1938_v42, 0.0  ;;  %vm407_vm6 = vcmp.eq.s32.totalorder %v1854_v22, %v1914_v55  ;;  %vm623_vm7 = vcmp.eq.s32.totalorder %v1854_v22, %v1923_v23 }
  0x6a   : > { %vm1059_vm8 = vcmp.eq.s32.totalorder %v1851_v21, %v1971_v4  ;;  %v762_v11 = vadd.f32 %v698_v9, %v482_v7  ;;  %vm1058_vm9 = vcmp.eq.s32.totalorder %v1851_v21, %v1968_v3  ;;  %v481_v5 = vsel %vm407_vm6, %v1929_v34, 0.0 }
  0x6b   : > { %v1133_v13 = vsel %vm1059_vm8, %v1954_v16, 0.0  ;;  %v1132_v14 = vsel %vm1058_vm9, %v1951_v63, 0.0  ;;  %v697_v15 = vsel %vm623_vm7, %v1941_v51, 0.0  ;;  %vm841_vm10 = vcmp.eq.s32.totalorder %v1854_v22, %v1935_v49 }
  0x6c   : > { %v1197_v17 = vadd.f32 %v1133_v13, %v981_v6  ;;  %v980_v20 = vadd.f32 %v916_v10, %v762_v11  ;;  %v761_v24 = vadd.f32 %v697_v15, %v481_v5  ;;  %v915_v32 = vsel %vm841_vm10, %v1944_v56, 0.0 }
  0x6d   : > { %vm1057_vm11 = vcmp.eq.s32.totalorder %v1854_v22, %v1971_v4  ;;  %vm406_vm12 = vcmp.eq.s32.totalorder %v1854_v22, %v1911_v1  ;;  %vm622_vm13 = vcmp.eq.s32.totalorder %v1854_v22, %v1917_v12  ;;  %vm840_vm14 = vcmp.eq.s32.totalorder %v1854_v22, %v1926_v26 }
  0x6e   : > { %1235 = vmatprep.subr.mxu0 %v1197_v17  ;;  %v1196_v21 = vadd.f32 %v1132_v14, %v980_v20  ;;  %v979_v40 = vadd.f32 %v915_v32, %v761_v24  ;;  %v1131_v47 = vsel %vm1057_vm11, %v1954_v16, 0.0  ;;  %v480_v50 = vsel %vm406_vm12, %v1920_v18, 0.0 }
  0x6f   : > { %v696_v33 = vsel %vm622_vm13, %v1932_v41, 0.0  ;;  %v914_v59 = vsel %vm840_vm14, %v1938_v42, 0.0  ;;  %vm1056_vm15 = vcmp.eq.s32.totalorder %v1854_v22, %v1968_v3  ;;  %vm405_vm0 = vcmp.eq.s32.totalorder %v1857_v27, %v1914_v55 }
  0x70   : > { %1236 = vmatpush1.msra.mxu0 %v1196_v21  ;;  %v1195_v57 = vadd.f32 %v1131_v47, %v979_v40  ;;  %v760_v60 = vadd.f32 %v696_v33, %v480_v50  ;;  %v1130_v39 = vsel %vm1056_vm15, %v1951_v63, 0.0  ;;  %v479_v19 = vsel %vm405_vm0, %v1929_v34, 0.0 }
  0x71   : > { %vm621_vm1 = vcmp.eq.s32.totalorder %v1857_v27, %v1923_v23  ;;  %vm839_vm2 = vcmp.eq.s32.totalorder %v1857_v27, %v1935_v49  ;;  %vm1055_vm3 = vcmp.eq.s32.totalorder %v1857_v27, %v1971_v4  ;;  %vm404_vm4 = vcmp.eq.s32.totalorder %v1857_v27, %v1911_v1 }
  0x72   : > { %1237 = vmatprep.subr.mxu0 %v1195_v57  ;;  %v978_v22 = vadd.f32 %v914_v59, %v760_v60  ;;  %v695_v25 = vsel %vm621_vm1, %v1941_v51, 0.0  ;;  %v913_v31 = vsel %vm839_vm2, %v1944_v56, 0.0  ;;  %v1129_v58 = vsel %vm1055_vm3, %v1954_v16, 0.0 }
  0x73   : > { %v759_v0 = vadd.f32 %v695_v25, %v479_v19  ;;  %v478_v48 = vsel %vm404_vm4, %v1920_v18, 0.0  ;;  %vm620_vm5 = vcmp.eq.s32.totalorder %v1857_v27, %v1917_v12  ;;  %vm838_vm6 = vcmp.eq.s32.totalorder %v1857_v27, %v1926_v26 }
  0x74   : > { %v1194_v6 = vadd.f32 %v1130_v39, %v978_v22  ;;  %v694_v7 = vsel %vm620_vm5, %v1932_v41, 0.0  ;;  %v912_v9 = vsel %vm838_vm6, %v1938_v42, 0.0  ;;  %vm1054_vm7 = vcmp.eq.s32.totalorder %v1857_v27, %v1968_v3 }
  0x75   : > { %v977_v10 = vadd.f32 %v913_v31, %v759_v0  ;;  %v758_v11 = vadd.f32 %v694_v7, %v478_v48  ;;  %v1128_v5 = vsel %vm1054_vm7, %v1951_v63, 0.0  ;;  %vm403_vm8 = vcmp.eq.s32.totalorder %v1860_v28, %v1914_v55 }
  0x76   : > { %1238 = vmatpush1.msra.mxu0 %v1194_v6  ;;  %v477_v13 = vsel %vm403_vm8, %v1929_v34, 0.0  ;;  %vm619_vm9 = vcmp.eq.s32.totalorder %v1860_v28, %v1923_v23  ;;  %vm837_vm10 = vcmp.eq.s32.totalorder %v1860_v28, %v1935_v49  ;;  %vm1053_vm11 = vcmp.eq.s32.totalorder %v1860_v28, %v1971_v4 }
  0x77   : > { %v1193_v27 = vadd.f32 %v1129_v58, %v977_v10  ;;  %v976_v14 = vadd.f32 %v912_v9, %v758_v11  ;;  %v693_v15 = vsel %vm619_vm9, %v1941_v51, 0.0  ;;  %v911_v17 = vsel %vm837_vm10, %v1944_v56, 0.0 }
  0x78   : > { %v757_v20 = vadd.f32 %v693_v15, %v477_v13  ;;  %v1127_v24 = vsel %vm1053_vm11, %v1954_v16, 0.0  ;;  %vm402_vm12 = vcmp.eq.s32.totalorder %v1860_v28, %v1911_v1  ;;  %vm618_vm13 = vcmp.eq.s32.totalorder %v1860_v28, %v1917_v12 }
  0x79   : > { %1239 = vmatprep.subr.mxu0 %v1193_v27  ;;  %v1192_v32 = vadd.f32 %v1128_v5, %v976_v14  ;;  %v476_v21 = vsel %vm402_vm12, %v1920_v18, 0.0  ;;  %v692_v40 = vsel %vm618_vm13, %v1932_v41, 0.0  ;;  %vm836_vm14 = vcmp.eq.s32.totalorder %v1860_v28, %v1926_v26 }
  0x7a   : > { %v975_v47 = vadd.f32 %v911_v17, %v757_v20  ;;  %v756_v50 = vadd.f32 %v692_v40, %v476_v21  ;;  %v910_v33 = vsel %vm836_vm14, %v1938_v42, 0.0  ;;  %vm1052_vm15 = vcmp.eq.s32.totalorder %v1860_v28, %v1968_v3 }
  0x7b   : > { %1240 = vmatpush1.msra.mxu0 %v1192_v32  ;;  %v1126_v59 = vsel %vm1052_vm15, %v1951_v63, 0.0  ;;  %vm401_vm0 = vcmp.eq.s32.totalorder %v1863_v29, %v1914_v55  ;;  %vm617_vm1 = vcmp.eq.s32.totalorder %v1863_v29, %v1923_v23  ;;  %vm835_vm2 = vcmp.eq.s32.totalorder %v1863_v29, %v1935_v49 }
  0x7c   : > { %v1191_v57 = vadd.f32 %v1127_v24, %v975_v47  ;;  %v974_v60 = vadd.f32 %v910_v33, %v756_v50  ;;  %v475_v39 = vsel %vm401_vm0, %v1929_v34, 0.0  ;;  %v691_v19 = vsel %vm617_vm1, %v1941_v51, 0.0 }
  0x7d   : > { %v755_v22 = vadd.f32 %v691_v19, %v475_v39  ;;  %v909_v28 = vsel %vm835_vm2, %v1944_v56, 0.0  ;;  %vm1051_vm3 = vcmp.eq.s32.totalorder %v1863_v29, %v1971_v4  ;;  %vm400_vm4 = vcmp.eq.s32.totalorder %v1863_v29, %v1911_v1 }
  0x7e   : > { %1241 = vmatprep.subr.mxu0 %v1191_v57  ;;  %v1190_v25 = vadd.f32 %v1126_v59, %v974_v60  ;;  %v1125_v31 = vsel %vm1051_vm3, %v1954_v16, 0.0  ;;  %v474_v58 = vsel %vm400_vm4, %v1920_v18, 0.0  ;;  %vm616_vm5 = vcmp.eq.s32.totalorder %v1863_v29, %v1917_v12 }
  0x7f   : > { %v973_v0 = vadd.f32 %v909_v28, %v755_v22  ;;  %v690_v48 = vsel %vm616_vm5, %v1932_v41, 0.0  ;;  %vm834_vm6 = vcmp.eq.s32.totalorder %v1863_v29, %v1926_v26  ;;  %vm1050_vm7 = vcmp.eq.s32.totalorder %v1863_v29, %v1968_v3 }
  0x80   : > { %1242 = vmatpush1.msra.mxu0 %v1190_v25  ;;  %v754_v6 = vadd.f32 %v690_v48, %v474_v58  ;;  %v908_v7 = vsel %vm834_vm6, %v1938_v42, 0.0  ;;  %v1124_v9 = vsel %vm1050_vm7, %v1951_v63, 0.0  ;;  %vm399_vm8 = vcmp.eq.s32.totalorder %v1866_v30, %v1914_v55 }
  0x81   : > { %v1189_v10 = vadd.f32 %v1125_v31, %v973_v0  ;;  %v473_v11 = vsel %vm399_vm8, %v1929_v34, 0.0  ;;  %vm615_vm9 = vcmp.eq.s32.totalorder %v1866_v30, %v1923_v23  ;;  %vm833_vm10 = vcmp.eq.s32.totalorder %v1866_v30, %v1935_v49 }
  0x82   : > { %v972_v5 = vadd.f32 %v908_v7, %v754_v6  ;;  %v689_v29 = vsel %vm615_vm9, %v1941_v51, 0.0  ;;  %v907_v13 = vsel %vm833_vm10, %v1944_v56, 0.0  ;;  %vm1049_vm11 = vcmp.eq.s32.totalorder %v1866_v30, %v1971_v4 }
  0x83   : > { %1243 = vmatprep.subr.mxu0 %v1189_v10  ;;  %v753_v27 = vadd.f32 %v689_v29, %v473_v11  ;;  %v1123_v14 = vsel %vm1049_vm11, %v1954_v16, 0.0  ;;  %vm398_vm12 = vcmp.eq.s32.totalorder %v1866_v30, %v1911_v1  ;;  %vm614_vm13 = vcmp.eq.s32.totalorder %v1866_v30, %v1917_v12 }
  0x84   : > { %v1188_v15 = vadd.f32 %v1124_v9, %v972_v5  ;;  %v472_v17 = vsel %vm398_vm12, %v1920_v18, 0.0  ;;  %v688_v20 = vsel %vm614_vm13, %v1932_v41, 0.0  ;;  %vm832_vm14 = vcmp.eq.s32.totalorder %v1866_v30, %v1926_v26 }
  0x85   : > { %v971_v24 = vadd.f32 %v907_v13, %v753_v27  ;;  %v752_v32 = vadd.f32 %v688_v20, %v472_v17  ;;  %v906_v21 = vsel %vm832_vm14, %v1938_v42, 0.0  ;;  %vm1048_vm15 = vcmp.eq.s32.totalorder %v1866_v30, %v1968_v3 }
  0x86   : > { %1244 = vmatpush1.msra.mxu0 %v1188_v15  ;;  %v1122_v40 = vsel %vm1048_vm15, %v1951_v63, 0.0  ;;  %vm397_vm0 = vcmp.eq.s32.totalorder %v1869_v35, %v1914_v55  ;;  %vm613_vm1 = vcmp.eq.s32.totalorder %v1869_v35, %v1923_v23  ;;  %vm831_vm2 = vcmp.eq.s32.totalorder %v1869_v35, %v1935_v49 }
  0x87   : > { %v1187_v47 = vadd.f32 %v1123_v14, %v971_v24  ;;  %v970_v50 = vadd.f32 %v906_v21, %v752_v32  ;;  %v471_v33 = vsel %vm397_vm0, %v1929_v34, 0.0  ;;  %v687_v59 = vsel %vm613_vm1, %v1941_v51, 0.0 }
  0x88   : > { %v751_v57 = vadd.f32 %v687_v59, %v471_v33  ;;  %v905_v30 = vsel %vm831_vm2, %v1944_v56, 0.0  ;;  %vm1047_vm3 = vcmp.eq.s32.totalorder %v1869_v35, %v1971_v4  ;;  %vm396_vm4 = vcmp.eq.s32.totalorder %v1869_v35, %v1911_v1 }
  0x89   : > { %1245 = vmatprep.subr.mxu0 %v1187_v47  ;;  %v1186_v60 = vadd.f32 %v1122_v40, %v970_v50  ;;  %v1121_v39 = vsel %vm1047_vm3, %v1954_v16, 0.0  ;;  %v470_v19 = vsel %vm396_vm4, %v1920_v18, 0.0  ;;  %vm612_vm5 = vcmp.eq.s32.totalorder %v1869_v35, %v1917_v12 }
  0x8a   : > { %v969_v22 = vadd.f32 %v905_v30, %v751_v57  ;;  %v686_v28 = vsel %vm612_vm5, %v1932_v41, 0.0  ;;  %vm830_vm6 = vcmp.eq.s32.totalorder %v1869_v35, %v1926_v26  ;;  %vm1046_vm7 = vcmp.eq.s32.totalorder %v1869_v35, %v1968_v3 }
  0x8b   : > { %1246 = vmatpush1.msra.mxu0 %v1186_v60  ;;  %v750_v25 = vadd.f32 %v686_v28, %v470_v19  ;;  %v904_v31 = vsel %vm830_vm6, %v1938_v42, 0.0  ;;  %v1120_v58 = vsel %vm1046_vm7, %v1951_v63, 0.0  ;;  %vm395_vm8 = vcmp.eq.s32.totalorder %v1872_v36, %v1914_v55 }
  0x8c   : > { %v1185_v0 = vadd.f32 %v1121_v39, %v969_v22  ;;  %v469_v48 = vsel %vm395_vm8, %v1929_v34, 0.0  ;;  %vm611_vm9 = vcmp.eq.s32.totalorder %v1872_v36, %v1923_v23  ;;  %vm829_vm10 = vcmp.eq.s32.totalorder %v1872_v36, %v1935_v49 }
  0x8d   : > { %v968_v6 = vadd.f32 %v904_v31, %v750_v25  ;;  %v685_v35 = vsel %vm611_vm9, %v1941_v51, 0.0  ;;  %v903_v7 = vsel %vm829_vm10, %v1944_v56, 0.0  ;;  %vm1045_vm11 = vcmp.eq.s32.totalorder %v1872_v36, %v1971_v4 }
  0x8e   : > { %1247 = vmatprep.subr.mxu0 %v1185_v0  ;;  %v749_v9 = vadd.f32 %v685_v35, %v469_v48  ;;  %v1119_v10 = vsel %vm1045_vm11, %v1954_v16, 0.0  ;;  %vm394_vm12 = vcmp.eq.s32.totalorder %v1872_v36, %v1911_v1  ;;  %vm610_vm13 = vcmp.eq.s32.totalorder %v1872_v36, %v1917_v12 }
  0x8f   : > { %v1184_v11 = vadd.f32 %v1120_v58, %v968_v6  ;;  %v468_v5 = vsel %vm394_vm12, %v1920_v18, 0.0  ;;  %v684_v29 = vsel %vm610_vm13, %v1932_v41, 0.0  ;;  %vm828_vm14 = vcmp.eq.s32.totalorder %v1872_v36, %v1926_v26 }
  0x90   : > { %v967_v13 = vadd.f32 %v903_v7, %v749_v9  ;;  %v748_v27 = vadd.f32 %v684_v29, %v468_v5  ;;  %v902_v14 = vsel %vm828_vm14, %v1938_v42, 0.0  ;;  %vm1044_vm15 = vcmp.eq.s32.totalorder %v1872_v36, %v1968_v3 }
  0x91   : > { %1248 = vmatpush1.msra.mxu0 %v1184_v11  ;;  %v1118_v15 = vsel %vm1044_vm15, %v1951_v63, 0.0  ;;  %vm393_vm0 = vcmp.eq.s32.totalorder %v1875_v37, %v1914_v55  ;;  %vm609_vm1 = vcmp.eq.s32.totalorder %v1875_v37, %v1923_v23  ;;  %vm827_vm2 = vcmp.eq.s32.totalorder %v1875_v37, %v1935_v49 }
  0x92   : > { %v1183_v17 = vadd.f32 %v1119_v10, %v967_v13  ;;  %v966_v20 = vadd.f32 %v902_v14, %v748_v27  ;;  %v467_v24 = vsel %vm393_vm0, %v1929_v34, 0.0  ;;  %v683_v32 = vsel %vm609_vm1, %v1941_v51, 0.0 }
  0x93   : > { %v747_v21 = vadd.f32 %v683_v32, %v467_v24  ;;  %v901_v36 = vsel %vm827_vm2, %v1944_v56, 0.0  ;;  %vm1043_vm3 = vcmp.eq.s32.totalorder %v1875_v37, %v1971_v4  ;;  %vm392_vm4 = vcmp.eq.s32.totalorder %v1875_v37, %v1911_v1 }
  0x94   : > { %1249 = vmatprep.subr.mxu0 %v1183_v17  ;;  %v1182_v40 = vadd.f32 %v1118_v15, %v966_v20  ;;  %v1117_v47 = vsel %vm1043_vm3, %v1954_v16, 0.0  ;;  %v466_v50 = vsel %vm392_vm4, %v1920_v18, 0.0  ;;  %vm608_vm5 = vcmp.eq.s32.totalorder %v1875_v37, %v1917_v12 }
  0x95   : > { %v965_v33 = vadd.f32 %v901_v36, %v747_v21  ;;  %v682_v59 = vsel %vm608_vm5, %v1932_v41, 0.0  ;;  %vm826_vm6 = vcmp.eq.s32.totalorder %v1875_v37, %v1926_v26  ;;  %vm1042_vm7 = vcmp.eq.s32.totalorder %v1875_v37, %v1968_v3 }
  0x96   : > { %1250 = vmatpush1.msra.mxu0 %v1182_v40  ;;  %v746_v57 = vadd.f32 %v682_v59, %v466_v50  ;;  %v900_v30 = vsel %vm826_vm6, %v1938_v42, 0.0  ;;  %v1116_v60 = vsel %vm1042_vm7, %v1951_v63, 0.0  ;;  %vm391_vm8 = vcmp.eq.s32.totalorder %v1878_v38, %v1914_v55 }
  0x97   : > { %v1181_v39 = vadd.f32 %v1117_v47, %v965_v33  ;;  %v465_v19 = vsel %vm391_vm8, %v1929_v34, 0.0  ;;  %vm607_vm9 = vcmp.eq.s32.totalorder %v1878_v38, %v1923_v23  ;;  %vm825_vm10 = vcmp.eq.s32.totalorder %v1878_v38, %v1935_v49 }
  0x98   : > { %v964_v22 = vadd.f32 %v900_v30, %v746_v57  ;;  %v681_v37 = vsel %vm607_vm9, %v1941_v51, 0.0  ;;  %v899_v28 = vsel %vm825_vm10, %v1944_v56, 0.0  ;;  %vm1041_vm11 = vcmp.eq.s32.totalorder %v1878_v38, %v1971_v4 }
  0x99   : > { %1251 = vmatprep.subr.mxu0 %v1181_v39  ;;  %v745_v25 = vadd.f32 %v681_v37, %v465_v19  ;;  %v1115_v31 = vsel %vm1041_vm11, %v1954_v16, 0.0  ;;  %vm390_vm12 = vcmp.eq.s32.totalorder %v1878_v38, %v1911_v1  ;;  %vm606_vm13 = vcmp.eq.s32.totalorder %v1878_v38, %v1917_v12 }
  0x9a   : > { %v1180_v58 = vadd.f32 %v1116_v60, %v964_v22  ;;  %v464_v0 = vsel %vm390_vm12, %v1920_v18, 0.0  ;;  %v680_v48 = vsel %vm606_vm13, %v1932_v41, 0.0  ;;  %vm824_vm14 = vcmp.eq.s32.totalorder %v1878_v38, %v1926_v26 }
  0x9b   : > { %v963_v6 = vadd.f32 %v899_v28, %v745_v25  ;;  %v744_v35 = vadd.f32 %v680_v48, %v464_v0  ;;  %v898_v7 = vsel %vm824_vm14, %v1938_v42, 0.0  ;;  %vm1040_vm15 = vcmp.eq.s32.totalorder %v1878_v38, %v1968_v3 }
  0x9c   : > { %1252 = vmatpush1.msra.mxu0 %v1180_v58  ;;  %v1114_v9 = vsel %vm1040_vm15, %v1951_v63, 0.0  ;;  %vm389_vm0 = vcmp.eq.s32.totalorder %v1881_v43, %v1914_v55  ;;  %vm605_vm1 = vcmp.eq.s32.totalorder %v1881_v43, %v1923_v23  ;;  %vm823_vm2 = vcmp.eq.s32.totalorder %v1881_v43, %v1935_v49 }
  0x9d   : > { %v1179_v10 = vadd.f32 %v1115_v31, %v963_v6  ;;  %v962_v11 = vadd.f32 %v898_v7, %v744_v35  ;;  %v463_v5 = vsel %vm389_vm0, %v1929_v34, 0.0  ;;  %v679_v29 = vsel %vm605_vm1, %v1941_v51, 0.0 }
  0x9e   : > { %v743_v13 = vadd.f32 %v679_v29, %v463_v5  ;;  %v897_v38 = vsel %vm823_vm2, %v1944_v56, 0.0  ;;  %vm1039_vm3 = vcmp.eq.s32.totalorder %v1881_v43, %v1971_v4  ;;  %vm388_vm4 = vcmp.eq.s32.totalorder %v1881_v43, %v1911_v1 }
  0x9f   : > { %1253 = vmatprep.subr.mxu0 %v1179_v10  ;;  %v1178_v27 = vadd.f32 %v1114_v9, %v962_v11  ;;  %v1113_v14 = vsel %vm1039_vm3, %v1954_v16, 0.0  ;;  %v462_v15 = vsel %vm388_vm4, %v1920_v18, 0.0  ;;  %vm604_vm5 = vcmp.eq.s32.totalorder %v1881_v43, %v1917_v12 }
  0xa0   : > { %v961_v17 = vadd.f32 %v897_v38, %v743_v13  ;;  %v678_v20 = vsel %vm604_vm5, %v1932_v41, 0.0  ;;  %vm822_vm6 = vcmp.eq.s32.totalorder %v1881_v43, %v1926_v26  ;;  %vm1038_vm7 = vcmp.eq.s32.totalorder %v1881_v43, %v1968_v3 }
  0xa1   : > { %1254 = vmatpush1.msra.mxu0 %v1178_v27  ;;  %v742_v24 = vadd.f32 %v678_v20, %v462_v15  ;;  %v896_v32 = vsel %vm822_vm6, %v1938_v42, 0.0  ;;  %v1112_v21 = vsel %vm1038_vm7, %v1951_v63, 0.0  ;;  %vm387_vm8 = vcmp.eq.s32.totalorder %v1884_v44, %v1914_v55 }
  0xa2   : > { %v1177_v36 = vadd.f32 %v1113_v14, %v961_v17  ;;  %v461_v40 = vsel %vm387_vm8, %v1929_v34, 0.0  ;;  %vm603_vm9 = vcmp.eq.s32.totalorder %v1884_v44, %v1923_v23  ;;  %vm821_vm10 = vcmp.eq.s32.totalorder %v1884_v44, %v1935_v49 }
  0xa3   : > { %v960_v47 = vadd.f32 %v896_v32, %v742_v24  ;;  %v677_v43 = vsel %vm603_vm9, %v1941_v51, 0.0  ;;  %v895_v50 = vsel %vm821_vm10, %v1944_v56, 0.0  ;;  %vm1037_vm11 = vcmp.eq.s32.totalorder %v1884_v44, %v1971_v4 }
  0xa4   : > { %1255 = vmatprep.subr.mxu0 %v1177_v36  ;;  %v741_v33 = vadd.f32 %v677_v43, %v461_v40  ;;  %v1111_v59 = vsel %vm1037_vm11, %v1954_v16, 0.0  ;;  %vm386_vm12 = vcmp.eq.s32.totalorder %v1884_v44, %v1911_v1  ;;  %vm602_vm13 = vcmp.eq.s32.totalorder %v1884_v44, %v1917_v12 }
  0xa5   : > { %v1176_v57 = vadd.f32 %v1112_v21, %v960_v47  ;;  %v460_v30 = vsel %vm386_vm12, %v1920_v18, 0.0  ;;  %v676_v60 = vsel %vm602_vm13, %v1932_v41, 0.0  ;;  %vm820_vm14 = vcmp.eq.s32.totalorder %v1884_v44, %v1926_v26 }
  0xa6   : > { %v959_v39 = vadd.f32 %v895_v50, %v741_v33  ;;  %v740_v19 = vadd.f32 %v676_v60, %v460_v30  ;;  %v894_v22 = vsel %vm820_vm14, %v1938_v42, 0.0  ;;  %vm1036_vm15 = vcmp.eq.s32.totalorder %v1884_v44, %v1968_v3 }
  0xa7   : > { %1256 = vmatpush1.msra.mxu0 %v1176_v57  ;;  %v1110_v37 = vsel %vm1036_vm15, %v1951_v63, 0.0  ;;  %vm385_vm0 = vcmp.eq.s32.totalorder %v1887_v45, %v1914_v55  ;;  %vm601_vm1 = vcmp.eq.s32.totalorder %v1887_v45, %v1923_v23  ;;  %vm819_vm2 = vcmp.eq.s32.totalorder %v1887_v45, %v1935_v49 }
  0xa8   : > { %v1175_v28 = vadd.f32 %v1111_v59, %v959_v39  ;;  %v958_v25 = vadd.f32 %v894_v22, %v740_v19  ;;  %v459_v31 = vsel %vm385_vm0, %v1929_v34, 0.0  ;;  %v675_v58 = vsel %vm601_vm1, %v1941_v51, 0.0 }
  0xa9   : > { %v739_v0 = vadd.f32 %v675_v58, %v459_v31  ;;  %v893_v44 = vsel %vm819_vm2, %v1944_v56, 0.0  ;;  %vm1035_vm3 = vcmp.eq.s32.totalorder %v1887_v45, %v1971_v4  ;;  %vm384_vm4 = vcmp.eq.s32.totalorder %v1887_v45, %v1911_v1 }
  0xaa   : > { %1257 = vmatprep.subr.mxu0 %v1175_v28  ;;  %v1174_v48 = vadd.f32 %v1110_v37, %v958_v25  ;;  %v1109_v6 = vsel %vm1035_vm3, %v1954_v16, 0.0  ;;  %v458_v35 = vsel %vm384_vm4, %v1920_v18, 0.0  ;;  %vm600_vm5 = vcmp.eq.s32.totalorder %v1887_v45, %v1917_v12 }
  0xab   : > { %v957_v7 = vadd.f32 %v893_v44, %v739_v0  ;;  %v674_v9 = vsel %vm600_vm5, %v1932_v41, 0.0  ;;  %vm818_vm6 = vcmp.eq.s32.totalorder %v1887_v45, %v1926_v26  ;;  %vm1034_vm7 = vcmp.eq.s32.totalorder %v1887_v45, %v1968_v3 }
  0xac   : > { %1258 = vmatpush1.msra.mxu0 %v1174_v48  ;;  %v738_v10 = vadd.f32 %v674_v9, %v458_v35  ;;  %v892_v11 = vsel %vm818_vm6, %v1938_v42, 0.0  ;;  %v1108_v5 = vsel %vm1034_vm7, %v1951_v63, 0.0  ;;  %vm383_vm8 = vcmp.eq.s32.totalorder %v1890_v46, %v1914_v55 }
  0xad   : > { %v1173_v29 = vadd.f32 %v1109_v6, %v957_v7  ;;  %v457_v13 = vsel %vm383_vm8, %v1929_v34, 0.0  ;;  %vm599_vm9 = vcmp.eq.s32.totalorder %v1890_v46, %v1923_v23  ;;  %vm817_vm10 = vcmp.eq.s32.totalorder %v1890_v46, %v1935_v49 }
  0xae   : > { %v956_v38 = vadd.f32 %v892_v11, %v738_v10  ;;  %v673_v45 = vsel %vm599_vm9, %v1941_v51, 0.0  ;;  %v891_v27 = vsel %vm817_vm10, %v1944_v56, 0.0  ;;  %vm1033_vm11 = vcmp.eq.s32.totalorder %v1890_v46, %v1971_v4 }
  0xaf   : > { %1259 = vmatprep.subr.mxu0 %v1173_v29  ;;  %v737_v14 = vadd.f32 %v673_v45, %v457_v13  ;;  %v1107_v15 = vsel %vm1033_vm11, %v1954_v16, 0.0  ;;  %vm382_vm12 = vcmp.eq.s32.totalorder %v1890_v46, %v1911_v1  ;;  %vm598_vm13 = vcmp.eq.s32.totalorder %v1890_v46, %v1917_v12 }
  0xb0   : > { %v1172_v17 = vadd.f32 %v1108_v5, %v956_v38  ;;  %v456_v20 = vsel %vm382_vm12, %v1920_v18, 0.0  ;;  %v672_v24 = vsel %vm598_vm13, %v1932_v41, 0.0  ;;  %vm816_vm14 = vcmp.eq.s32.totalorder %v1890_v46, %v1926_v26 }
  0xb1   : > { %v955_v32 = vadd.f32 %v891_v27, %v737_v14  ;;  %v736_v21 = vadd.f32 %v672_v24, %v456_v20  ;;  %v890_v36 = vsel %vm816_vm14, %v1938_v42, 0.0  ;;  %vm1032_vm15 = vcmp.eq.s32.totalorder %v1890_v46, %v1968_v3 }
  0xb2   : > { %1260 = vmatpush1.msra.mxu0 %v1172_v17  ;;  %v1106_v40 = vsel %vm1032_vm15, %v1951_v63, 0.0  ;;  %vm381_vm0 = vcmp.eq.s32.totalorder %v1893_v52, %v1914_v55  ;;  %vm597_vm1 = vcmp.eq.s32.totalorder %v1893_v52, %v1923_v23  ;;  %vm815_vm2 = vcmp.eq.s32.totalorder %v1893_v52, %v1935_v49 }
  0xb3   : > { %v1171_v47 = vadd.f32 %v1107_v15, %v955_v32  ;;  %v954_v43 = vadd.f32 %v890_v36, %v736_v21  ;;  %v455_v50 = vsel %vm381_vm0, %v1929_v34, 0.0  ;;  %v671_v33 = vsel %vm597_vm1, %v1941_v51, 0.0 }
  0xb4   : > { %v735_v59 = vadd.f32 %v671_v33, %v455_v50  ;;  %v889_v46 = vsel %vm815_vm2, %v1944_v56, 0.0  ;;  %vm1031_vm3 = vcmp.eq.s32.totalorder %v1893_v52, %v1971_v4  ;;  %vm380_vm4 = vcmp.eq.s32.totalorder %v1893_v52, %v1911_v1 }
  0xb5   : > { %1261 = vmatprep.subr.mxu0 %v1171_v47  ;;  %v1170_v57 = vadd.f32 %v1106_v40, %v954_v43  ;;  %v1105_v30 = vsel %vm1031_vm3, %v1954_v16, 0.0  ;;  %v454_v60 = vsel %vm380_vm4, %v1920_v18, 0.0  ;;  %vm596_vm5 = vcmp.eq.s32.totalorder %v1893_v52, %v1917_v12 }
  0xb6   : > { %v953_v39 = vadd.f32 %v889_v46, %v735_v59  ;;  %v670_v19 = vsel %vm596_vm5, %v1932_v41, 0.0  ;;  %vm814_vm6 = vcmp.eq.s32.totalorder %v1893_v52, %v1926_v26  ;;  %vm1030_vm7 = vcmp.eq.s32.totalorder %v1893_v52, %v1968_v3 }
  0xb7   : > { %1262 = vmatpush1.msra.mxu0 %v1170_v57  ;;  %v734_v22 = vadd.f32 %v670_v19, %v454_v60  ;;  %v888_v37 = vsel %vm814_vm6, %v1938_v42, 0.0  ;;  %v1104_v28 = vsel %vm1030_vm7, %v1951_v63, 0.0  ;;  %vm379_vm8 = vcmp.eq.s32.totalorder %v1841_v2, %v1914_v55 }
  0xb8   : > { %v1169_v25 = vadd.f32 %v1105_v30, %v953_v39  ;;  %v453_v31 = vsel %vm379_vm8, %v1929_v34, 0.0  ;;  %vm595_vm9 = vcmp.eq.s32.totalorder %v1841_v2, %v1923_v23  ;;  %vm813_vm10 = vcmp.eq.s32.totalorder %v1841_v2, %v1935_v49 }
  0xb9   : > { %v952_v58 = vadd.f32 %v888_v37, %v734_v22  ;;  %v669_v52 = vsel %vm595_vm9, %v1941_v51, 0.0  ;;  %v887_v0 = vsel %vm813_vm10, %v1944_v56, 0.0  ;;  %vm1029_vm11 = vcmp.eq.s32.totalorder %v1841_v2, %v1971_v4 }
  0xba   : > { %1263 = vmatprep.subr.mxu0 %v1169_v25  ;;  %v733_v44 = vadd.f32 %v669_v52, %v453_v31  ;;  %v1103_v48 = vsel %vm1029_vm11, %v1954_v16, 0.0  ;;  %vm378_vm12 = vcmp.eq.s32.totalorder %v1841_v2, %v1911_v1  ;;  %vm594_vm13 = vcmp.eq.s32.totalorder %v1841_v2, %v1917_v12 }
  0xbb   : > { %v1168_v6 = vadd.f32 %v1104_v28, %v952_v58  ;;  %v452_v35 = vsel %vm378_vm12, %v1920_v18, 0.0  ;;  %v668_v7 = vsel %vm594_vm13, %v1932_v41, 0.0  ;;  %vm812_vm14 = vcmp.eq.s32.totalorder %v1841_v2, %v1926_v26 }
  0xbc   : > { %v951_v9 = vadd.f32 %v887_v0, %v733_v44  ;;  %v732_v10 = vadd.f32 %v668_v7, %v452_v35  ;;  %v886_v11 = vsel %vm812_vm14, %v1938_v42, 0.0  ;;  %vm1028_vm15 = vcmp.eq.s32.totalorder %v1841_v2, %v1968_v3 }
  0xbd   : > { %1264 = vmatpush1.msra.mxu0 %v1168_v6  ;;  %v1102_v5 = vsel %vm1028_vm15, %v1951_v63, 0.0  ;;  %vm441_vm0 = vcmp.eq.s32.totalorder %v1896_v53, %v1914_v55  ;;  %vm657_vm1 = vcmp.eq.s32.totalorder %v1896_v53, %v1923_v23  ;;  %vm875_vm2 = vcmp.eq.s32.totalorder %v1896_v53, %v1935_v49 }
  0xbe   : > { %v1167_v29 = vadd.f32 %v1103_v48, %v951_v9  ;;  %v950_v13 = vadd.f32 %v886_v11, %v732_v10  ;;  %v515_v38 = vsel %vm441_vm0, %v1929_v34, 0.0  ;;  %v731_v45 = vsel %vm657_vm1, %v1941_v51, 0.0 }
  0xbf   : > { %v795_v27 = vadd.f32 %v731_v45, %v515_v38  ;;  %v949_v14 = vsel %vm875_vm2, %v1944_v56, 0.0  ;;  %vm1091_vm3 = vcmp.eq.s32.totalorder %v1896_v53, %v1971_v4  ;;  %vm440_vm4 = vcmp.eq.s32.totalorder %v1896_v53, %v1911_v1 }
  0xc0   : > { %1265 = vmatprep.subr.mxu0 %v1167_v29  ;;  %v1166_v15 = vadd.f32 %v1102_v5, %v950_v13  ;;  %v1165_v17 = vsel %vm1091_vm3, %v1954_v16, 0.0  ;;  %v514_v20 = vsel %vm440_vm4, %v1920_v18, 0.0  ;;  %vm656_vm5 = vcmp.eq.s32.totalorder %v1896_v53, %v1917_v12 }
  0xc1   : > { %v1013_v24 = vadd.f32 %v949_v14, %v795_v27  ;;  %v730_v32 = vsel %vm656_vm5, %v1932_v41, 0.0  ;;  %vm874_vm6 = vcmp.eq.s32.totalorder %v1896_v53, %v1926_v26  ;;  %vm1090_vm7 = vcmp.eq.s32.totalorder %v1896_v53, %v1968_v3 }
  0xc2   : > { %1266 = vmatpush1.msra.mxu0 %v1166_v15  ;;  %v794_v21 = vadd.f32 %v730_v32, %v514_v20  ;;  %v948_v36 = vsel %vm874_vm6, %v1938_v42, 0.0  ;;  %v1164_v40 = vsel %vm1090_vm7, %v1951_v63, 0.0  ;;  %vm439_vm8 = vcmp.eq.s32.totalorder %v1899_v54, %v1914_v55 }
  0xc3   : > { %v1229_v47 = vadd.f32 %v1165_v17, %v1013_v24  ;;  %v513_v43 = vsel %vm439_vm8, %v1929_v34, 0.0  ;;  %vm655_vm9 = vcmp.eq.s32.totalorder %v1899_v54, %v1923_v23  ;;  %vm873_vm10 = vcmp.eq.s32.totalorder %v1899_v54, %v1935_v49 }
  0xc4   : > { %v1012_v50 = vadd.f32 %v948_v36, %v794_v21  ;;  %v729_v53 = vsel %vm655_vm9, %v1941_v51, 0.0  ;;  %v947_v33 = vsel %vm873_vm10, %v1944_v56, 0.0  ;;  %vm1089_vm11 = vcmp.eq.s32.totalorder %v1899_v54, %v1971_v4 }
  0xc5   : > { %1267 = vmatprep.subr.mxu0 %v1229_v47  ;;  %v793_v59 = vadd.f32 %v729_v53, %v513_v43  ;;  %v1163_v46 = vsel %vm1089_vm11, %v1954_v16, 0.0  ;;  %vm438_vm12 = vcmp.eq.s32.totalorder %v1899_v54, %v1911_v1  ;;  %vm654_vm13 = vcmp.eq.s32.totalorder %v1899_v54, %v1917_v12 }
  0xc6   : > { %v1228_v57 = vadd.f32 %v1164_v40, %v1012_v50  ;;  %v512_v30 = vsel %vm438_vm12, %v1920_v18, 0.0  ;;  %v728_v60 = vsel %vm654_vm13, %v1932_v41, 0.0  ;;  %vm872_vm14 = vcmp.eq.s32.totalorder %v1899_v54, %v1926_v26 }
  0xc7   : > { %v1011_v39 = vadd.f32 %v947_v33, %v793_v59  ;;  %v792_v19 = vadd.f32 %v728_v60, %v512_v30  ;;  %v946_v22 = vsel %vm872_vm14, %v1938_v42, 0.0  ;;  %vm1088_vm15 = vcmp.eq.s32.totalorder %v1899_v54, %v1968_v3 }
  0xc8   : > { %1268 = vmatpush2.msra.mxu0 %v1228_v57  ;;  %v1162_v37 = vsel %vm1088_vm15, %v1951_v63, 0.0  ;;  %vm437_vm0 = vcmp.eq.s32.totalorder %v1902_v61, %v1914_v55  ;;  %vm653_vm1 = vcmp.eq.s32.totalorder %v1902_v61, %v1923_v23  ;;  %vm871_vm2 = vcmp.eq.s32.totalorder %v1902_v61, %v1935_v49 }
  0xc9   : > { %v1227_v28 = vadd.f32 %v1163_v46, %v1011_v39  ;;  %v1010_v25 = vadd.f32 %v946_v22, %v792_v19  ;;  %v511_v31 = vsel %vm437_vm0, %v1929_v34, 0.0  ;;  %v727_v58 = vsel %vm653_vm1, %v1941_v51, 0.0 }
  0xca   : > { %v791_v52 = vadd.f32 %v727_v58, %v511_v31  ;;  %v945_v54 = vsel %vm871_vm2, %v1944_v56, 0.0  ;;  %vm1087_vm3 = vcmp.eq.s32.totalorder %v1902_v61, %v1971_v4  ;;  %vm436_vm4 = vcmp.eq.s32.totalorder %v1902_v61, %v1911_v1 }
  0xcb   : > { %1269 = vmatprep.subr.mxu0 %v1227_v28  ;;  %v1226_v0 = vadd.f32 %v1162_v37, %v1010_v25  ;;  %v1161_v44 = vsel %vm1087_vm3, %v1954_v16, 0.0  ;;  %v510_v48 = vsel %vm436_vm4, %v1920_v18, 0.0  ;;  %vm652_vm5 = vcmp.eq.s32.totalorder %v1902_v61, %v1917_v12 }
  0xcc   : > { %v1009_v6 = vadd.f32 %v945_v54, %v791_v52  ;;  %v726_v35 = vsel %vm652_vm5, %v1932_v41, 0.0  ;;  %vm870_vm6 = vcmp.eq.s32.totalorder %v1902_v61, %v1926_v26  ;;  %vm1086_vm7 = vcmp.eq.s32.totalorder %v1902_v61, %v1968_v3 }
  0xcd   : > { %1270 = vmatpush2.msra.mxu0 %v1226_v0  ;;  %v790_v7 = vadd.f32 %v726_v35, %v510_v48  ;;  %v944_v9 = vsel %vm870_vm6, %v1938_v42, 0.0  ;;  %v1160_v10 = vsel %vm1086_vm7, %v1951_v63, 0.0  ;;  %vm435_vm8 = vcmp.eq.s32.totalorder %v1905_v62, %v1914_v55 }
  0xce   : > { %v1225_v11 = vadd.f32 %v1161_v44, %v1009_v6  ;;  %v509_v5 = vsel %vm435_vm8, %v1929_v34, 0.0  ;;  %vm651_vm9 = vcmp.eq.s32.totalorder %v1905_v62, %v1923_v23  ;;  %vm869_vm10 = vcmp.eq.s32.totalorder %v1905_v62, %v1935_v49 }
  0xcf   : > { %v1008_v29 = vadd.f32 %v944_v9, %v790_v7  ;;  %v725_v61 = vsel %vm651_vm9, %v1941_v51, 0.0  ;;  %v943_v13 = vsel %vm869_vm10, %v1944_v56, 0.0  ;;  %vm1085_vm11 = vcmp.eq.s32.totalorder %v1905_v62, %v1971_v4 }
  0xd0   : > { %1271 = vmatprep.subr.mxu0 %v1225_v11  ;;  %v789_v38 = vadd.f32 %v725_v61, %v509_v5  ;;  %v1159_v45 = vsel %vm1085_vm11, %v1954_v16, 0.0  ;;  %vm434_vm12 = vcmp.eq.s32.totalorder %v1905_v62, %v1911_v1  ;;  %vm650_vm13 = vcmp.eq.s32.totalorder %v1905_v62, %v1917_v12 }
  0xd1   : > { %v1224_v27 = vadd.f32 %v1160_v10, %v1008_v29  ;;  %v508_v14 = vsel %vm434_vm12, %v1920_v18, 0.0  ;;  %v724_v15 = vsel %vm650_vm13, %v1932_v41, 0.0  ;;  %vm868_vm14 = vcmp.eq.s32.totalorder %v1905_v62, %v1926_v26 }
  0xd2   : > { %v1007_v17 = vadd.f32 %v943_v13, %v789_v38  ;;  %v788_v20 = vadd.f32 %v724_v15, %v508_v14  ;;  %v942_v24 = vsel %vm868_vm14, %v1938_v42, 0.0  ;;  %vm1084_vm15 = vcmp.eq.s32.totalorder %v1905_v62, %v1968_v3 }
  0xd3   : > { %1272 = vmatpush2.msra.mxu0 %v1224_v27  ;;  %v1158_v32 = vsel %vm1084_vm15, %v1951_v63, 0.0  ;;  %vm433_vm0 = vcmp.eq.s32.totalorder %v1908_v8, %v1914_v55  ;;  %vm649_vm1 = vcmp.eq.s32.totalorder %v1908_v8, %v1923_v23  ;;  %vm867_vm2 = vcmp.eq.s32.totalorder %v1908_v8, %v1935_v49 }
  0xd4   : > { %v1223_v21 = vadd.f32 %v1159_v45, %v1007_v17  ;;  %v1006_v36 = vadd.f32 %v942_v24, %v788_v20  ;;  %v507_v40 = vsel %vm433_vm0, %v1929_v34, 0.0  ;;  %v723_v47 = vsel %vm649_vm1, %v1941_v51, 0.0 }
  0xd5   : > { %v787_v43 = vadd.f32 %v723_v47, %v507_v40  ;;  %v941_v62 = vsel %vm867_vm2, %v1944_v56, 0.0  ;;  %vm1083_vm3 = vcmp.eq.s32.totalorder %v1908_v8, %v1971_v4  ;;  %vm432_vm4 = vcmp.eq.s32.totalorder %v1908_v8, %v1911_v1 }
  0xd6   : > { %1273 = vmatprep.subr.mxu0 %v1223_v21  ;;  %v1222_v50 = vadd.f32 %v1158_v32, %v1006_v36  ;;  %v1157_v53 = vsel %vm1083_vm3, %v1954_v16, 0.0  ;;  %v506_v33 = vsel %vm432_vm4, %v1920_v18, 0.0  ;;  %vm648_vm5 = vcmp.eq.s32.totalorder %v1908_v8, %v1917_v12 }
  0xd7   : > { %v1005_v59 = vadd.f32 %v941_v62, %v787_v43  ;;  %v722_v46 = vsel %vm648_vm5, %v1932_v41, 0.0  ;;  %vm866_vm6 = vcmp.eq.s32.totalorder %v1908_v8, %v1926_v26  ;;  %vm1082_vm7 = vcmp.eq.s32.totalorder %v1908_v8, %v1968_v3 }
  0xd8   : > { %1274 = vmatpush2.msra.mxu0 %v1222_v50  ;;  %v786_v57 = vadd.f32 %v722_v46, %v506_v33  ;;  %v940_v30 = vsel %vm866_vm6, %v1938_v42, 0.0  ;;  %v1156_v60 = vsel %vm1082_vm7, %v1951_v63, 0.0  ;;  %v355_v39 = vadd.s32 208, %v1841_v2 }
  0xd9   : > { %v1221_v19 = vadd.f32 %v1157_v53, %v1005_v59  ;;  %v354_v22 = vadd.s32 200, %v1841_v2  ;;  %v2465_v37 = vadd.s32 192, %v1841_v2  ;;  %v2468_v28 = vadd.s32 184, %v1841_v2 }
  0xda   : > { %v1004_v25 = vadd.f32 %v940_v30, %v786_v57  ;;  %vm431_vm8 = vcmp.eq.s32.totalorder %v355_v39, %v1914_v55  ;;  %vm647_vm9 = vcmp.eq.s32.totalorder %v355_v39, %v1923_v23  ;;  %vm865_vm10 = vcmp.eq.s32.totalorder %v355_v39, %v1935_v49 }
  0xdb   : > { %1275 = vmatprep.subr.mxu0 %v1221_v19  ;;  %v505_v8 = vsel %vm431_vm8, %v1929_v34, 0.0  ;;  %v721_v31 = vsel %vm647_vm9, %v1941_v51, 0.0  ;;  %v939_v58 = vsel %vm865_vm10, %v1944_v56, 0.0  ;;  %vm1081_vm11 = vcmp.eq.s32.totalorder %v355_v39, %v1971_v4 }
  0xdc   : > { %v1220_v52 = vadd.f32 %v1156_v60, %v1004_v25  ;;  %v785_v54 = vadd.f32 %v721_v31, %v505_v8  ;;  %v1155_v0 = vsel %vm1081_vm11, %v1954_v16, 0.0  ;;  %vm430_vm12 = vcmp.eq.s32.totalorder %v355_v39, %v1911_v1 }
  0xdd   : > { %v504_v44 = vsel %vm430_vm12, %v1920_v18, 0.0  ;;  %vm646_vm13 = vcmp.eq.s32.totalorder %v355_v39, %v1917_v12  ;;  %vm864_vm14 = vcmp.eq.s32.totalorder %v355_v39, %v1926_v26  ;;  %vm1080_vm15 = vcmp.eq.s32.totalorder %v355_v39, %v1968_v3 }
  0xde   : > { %1276 = vmatpush2.msra.mxu0 %v1220_v52  ;;  %v1003_v48 = vadd.f32 %v939_v58, %v785_v54  ;;  %v720_v6 = vsel %vm646_vm13, %v1932_v41, 0.0  ;;  %v938_v35 = vsel %vm864_vm14, %v1938_v42, 0.0  ;;  %v1154_v7 = vsel %vm1080_vm15, %v1951_v63, 0.0 }
  0xdf   : > { %v784_v9 = vadd.f32 %v720_v6, %v504_v44  ;;  %vm429_vm0 = vcmp.eq.s32.totalorder %v354_v22, %v1914_v55  ;;  %vm645_vm1 = vcmp.eq.s32.totalorder %v354_v22, %v1923_v23  ;;  %vm863_vm2 = vcmp.eq.s32.totalorder %v354_v22, %v1935_v49 }
  0xe0   : > { %v1219_v10 = vadd.f32 %v1155_v0, %v1003_v48  ;;  %v503_v11 = vsel %vm429_vm0, %v1929_v34, 0.0  ;;  %v719_v5 = vsel %vm645_vm1, %v1941_v51, 0.0  ;;  %v937_v29 = vsel %vm863_vm2, %v1944_v56, 0.0 }
  0xe1   : > { %v1002_v61 = vadd.f32 %v938_v35, %v784_v9  ;;  %v783_v13 = vadd.f32 %v719_v5, %v503_v11  ;;  %vm1079_vm3 = vcmp.eq.s32.totalorder %v354_v22, %v1971_v4  ;;  %vm428_vm4 = vcmp.eq.s32.totalorder %v354_v22, %v1911_v1 }
  0xe2   : > { %1277 = vmatprep.subr.mxu0 %v1219_v10  ;;  %v1153_v38 = vsel %vm1079_vm3, %v1954_v16, 0.0  ;;  %v502_v45 = vsel %vm428_vm4, %v1920_v18, 0.0  ;;  %vm644_vm5 = vcmp.eq.s32.totalorder %v354_v22, %v1917_v12  ;;  %vm862_vm6 = vcmp.eq.s32.totalorder %v354_v22, %v1926_v26 }
  0xe3   : > { %v1218_v27 = vadd.f32 %v1154_v7, %v1002_v61  ;;  %v1001_v14 = vadd.f32 %v937_v29, %v783_v13  ;;  %v718_v15 = vsel %vm644_vm5, %v1932_v41, 0.0  ;;  %v936_v17 = vsel %vm862_vm6, %v1938_v42, 0.0 }
  0xe4   : > { %v782_v20 = vadd.f32 %v718_v15, %v502_v45  ;;  %vm1078_vm7 = vcmp.eq.s32.totalorder %v354_v22, %v1968_v3  ;;  %vm427_vm8 = vcmp.eq.s32.totalorder %v2465_v37, %v1914_v55  ;;  %vm643_vm9 = vcmp.eq.s32.totalorder %v2465_v37, %v1923_v23 }
  0xe5   : > { %1278 = vmatpush2.msra.mxu0 %v1218_v27  ;;  %v1217_v24 = vadd.f32 %v1153_v38, %v1001_v14  ;;  %v1152_v32 = vsel %vm1078_vm7, %v1951_v63, 0.0  ;;  %v501_v21 = vsel %vm427_vm8, %v1929_v34, 0.0  ;;  %v717_v36 = vsel %vm643_vm9, %v1941_v51, 0.0 }
  0xe6   : > { %v1000_v40 = vadd.f32 %v936_v17, %v782_v20  ;;  %v781_v47 = vadd.f32 %v717_v36, %v501_v21  ;;  %vm861_vm10 = vcmp.eq.s32.totalorder %v2465_v37, %v1935_v49  ;;  %vm1077_vm11 = vcmp.eq.s32.totalorder %v2465_v37, %v1971_v4 }
  0xe7   : > { %1279 = vmatprep.subr.mxu0 %v1217_v24  ;;  %v935_v43 = vsel %vm861_vm10, %v1944_v56, 0.0  ;;  %v1151_v62 = vsel %vm1077_vm11, %v1954_v16, 0.0  ;;  %vm426_vm12 = vcmp.eq.s32.totalorder %v2465_v37, %v1911_v1  ;;  %vm642_vm13 = vcmp.eq.s32.totalorder %v2465_v37, %v1917_v12 }
  0xe8   : > { %v1216_v50 = vadd.f32 %v1152_v32, %v1000_v40  ;;  %v999_v53 = vadd.f32 %v935_v43, %v781_v47  ;;  %v500_v33 = vsel %vm426_vm12, %v1920_v18, 0.0  ;;  %v716_v59 = vsel %vm642_vm13, %v1932_v41, 0.0 }
  0xe9   : > { %v780_v46 = vadd.f32 %v716_v59, %v500_v33  ;;  %vm860_vm14 = vcmp.eq.s32.totalorder %v2465_v37, %v1926_v26  ;;  %vm1076_vm15 = vcmp.eq.s32.totalorder %v2465_v37, %v1968_v3  ;;  %vm425_vm0 = vcmp.eq.s32.totalorder %v2468_v28, %v1914_v55 }
  0xea   : > { %1280 = vmatpush2.msra.mxu0 %v1216_v50  ;;  %v1215_v57 = vadd.f32 %v1151_v62, %v999_v53  ;;  %v934_v30 = vsel %vm860_vm14, %v1938_v42, 0.0  ;;  %v1150_v60 = vsel %vm1076_vm15, %v1951_v63, 0.0  ;;  %v499_v39 = vsel %vm425_vm0, %v1929_v34, 0.0 }
  0xeb   : > { %v998_v19 = vadd.f32 %v934_v30, %v780_v46  ;;  %vm641_vm1 = vcmp.eq.s32.totalorder %v2468_v28, %v1923_v23  ;;  %vm859_vm2 = vcmp.eq.s32.totalorder %v2468_v28, %v1935_v49  ;;  %vm1075_vm3 = vcmp.eq.s32.totalorder %v2468_v28, %v1971_v4 }
  0xec   : > { %1281 = vmatprep.subr.mxu0 %v1215_v57  ;;  %v715_v22 = vsel %vm641_vm1, %v1941_v51, 0.0  ;;  %v933_v37 = vsel %vm859_vm2, %v1944_v56, 0.0  ;;  %v1149_v25 = vsel %vm1075_vm3, %v1954_v16, 0.0  ;;  %vm424_vm4 = vcmp.eq.s32.totalorder %v2468_v28, %v1911_v1 }
  0xed   : > { %v1214_v8 = vadd.f32 %v1150_v60, %v998_v19  ;;  %v779_v31 = vadd.f32 %v715_v22, %v499_v39  ;;  %v498_v58 = vsel %vm424_vm4, %v1920_v18, 0.0  ;;  %vm640_vm5 = vcmp.eq.s32.totalorder %v2468_v28, %v1917_v12 }
  0xee   : > { %v714_v52 = vsel %vm640_vm5, %v1932_v41, 0.0  ;;  %vm858_vm6 = vcmp.eq.s32.totalorder %v2468_v28, %v1926_v26  ;;  %vm1074_vm7 = vcmp.eq.s32.totalorder %v2468_v28, %v1968_v3  ;;  %v351_v54 = vadd.s32 176, %v1841_v2 }
  0xef   : > { %1282 = vmatpush2.msra.mxu0 %v1214_v8  ;;  %v997_v0 = vadd.f32 %v933_v37, %v779_v31  ;;  %v778_v44 = vadd.f32 %v714_v52, %v498_v58  ;;  %v932_v48 = vsel %vm858_vm6, %v1938_v42, 0.0  ;;  %v1148_v6 = vsel %vm1074_vm7, %v1951_v63, 0.0 }
  0xf0   : > { %vm423_vm8 = vcmp.eq.s32.totalorder %v351_v54, %v1914_v55  ;;  %vm639_vm9 = vcmp.eq.s32.totalorder %v351_v54, %v1923_v23  ;;  %vm857_vm10 = vcmp.eq.s32.totalorder %v351_v54, %v1935_v49  ;;  %vm1073_vm11 = vcmp.eq.s32.totalorder %v351_v54, %v1971_v4 }
  0xf1   : > { %v1213_v35 = vadd.f32 %v1149_v25, %v997_v0  ;;  %v996_v7 = vadd.f32 %v932_v48, %v778_v44  ;;  %v497_v28 = vsel %vm423_vm8, %v1929_v34, 0.0  ;;  %v713_v9 = vsel %vm639_vm9, %v1941_v51, 0.0 }
  0xf2   : > { %v777_v10 = vadd.f32 %v713_v9, %v497_v28  ;;  %v931_v11 = vsel %vm857_vm10, %v1944_v56, 0.0  ;;  %v1147_v5 = vsel %vm1073_vm11, %v1954_v16, 0.0  ;;  %vm422_vm12 = vcmp.eq.s32.totalorder %v351_v54, %v1911_v1 }
  0xf3   : > { %1283 = vmatprep.subr.mxu0 %v1213_v35  ;;  %v1212_v29 = vadd.f32 %v1148_v6, %v996_v7  ;;  %v496_v61 = vsel %vm422_vm12, %v1920_v18, 0.0  ;;  %vm638_vm13 = vcmp.eq.s32.totalorder %v351_v54, %v1917_v12  ;;  %vm856_vm14 = vcmp.eq.s32.totalorder %v351_v54, %v1926_v26 }
  0xf4   : > { %v995_v13 = vadd.f32 %v931_v11, %v777_v10  ;;  %v712_v38 = vsel %vm638_vm13, %v1932_v41, 0.0  ;;  %v930_v45 = vsel %vm856_vm14, %v1938_v42, 0.0  ;;  %vm1072_vm15 = vcmp.eq.s32.totalorder %v351_v54, %v1968_v3 }
  0xf5   : > { %1284 = vmatpush2.msra.mxu0 %v1212_v29  ;;  %v776_v27 = vadd.f32 %v712_v38, %v496_v61  ;;  %v1146_v14 = vsel %vm1072_vm15, %v1951_v63, 0.0  ;;  %v350_v15 = vadd.s32 168, %v1841_v2  ;;  %v349_v17 = vadd.s32 160, %v1841_v2 }
  0xf6   : > { %v1211_v20 = vadd.f32 %v1147_v5, %v995_v13  ;;  %v2570_v24 = vadd.s32 152, %v1841_v2  ;;  %v2573_v32 = vadd.s32 144, %v1841_v2  ;;  %v2576_v21 = vadd.s32 136, %v1841_v2 }
  0xf7   : > { %v994_v36 = vadd.f32 %v930_v45, %v776_v27  ;;  %vm421_vm0 = vcmp.eq.s32.totalorder %v350_v15, %v1914_v55  ;;  %vm637_vm1 = vcmp.eq.s32.totalorder %v350_v15, %v1923_v23  ;;  %vm855_vm2 = vcmp.eq.s32.totalorder %v350_v15, %v1935_v49 }
  0xf8   : > { %1285 = vmatprep.subr.mxu0 %v1211_v20  ;;  %v495_v40 = vsel %vm421_vm0, %v1929_v34, 0.0  ;;  %v711_v47 = vsel %vm637_vm1, %v1941_v51, 0.0  ;;  %v929_v43 = vsel %vm855_vm2, %v1944_v56, 0.0  ;;  %vm1071_vm3 = vcmp.eq.s32.totalorder %v350_v15, %v1971_v4 }
  0xf9   : > { %v1210_v62 = vadd.f32 %v1146_v14, %v994_v36  ;;  %v775_v50 = vadd.f32 %v711_v47, %v495_v40  ;;  %v1145_v53 = vsel %vm1071_vm3, %v1954_v16, 0.0  ;;  %vm420_vm4 = vcmp.eq.s32.totalorder %v350_v15, %v1911_v1 }
  0xfa   : > { %v494_v33 = vsel %vm420_vm4, %v1920_v18, 0.0  ;;  %vm636_vm5 = vcmp.eq.s32.totalorder %v350_v15, %v1917_v12  ;;  %vm854_vm6 = vcmp.eq.s32.totalorder %v350_v15, %v1926_v26  ;;  %vm1070_vm7 = vcmp.eq.s32.totalorder %v350_v15, %v1968_v3 }
  0xfb   : > { %1286 = vmatpush2.msra.mxu0 %v1210_v62  ;;  %v993_v59 = vadd.f32 %v929_v43, %v775_v50  ;;  %v710_v46 = vsel %vm636_vm5, %v1932_v41, 0.0  ;;  %v928_v57 = vsel %vm854_vm6, %v1938_v42, 0.0  ;;  %v1144_v30 = vsel %vm1070_vm7, %v1951_v63, 0.0 }
  0xfc   : > { %v774_v60 = vadd.f32 %v710_v46, %v494_v33  ;;  %vm419_vm8 = vcmp.eq.s32.totalorder %v349_v17, %v1914_v55  ;;  %vm635_vm9 = vcmp.eq.s32.totalorder %v349_v17, %v1923_v23  ;;  %vm853_vm10 = vcmp.eq.s32.totalorder %v349_v17, %v1935_v49 }
  0xfd   : > { %v1209_v39 = vadd.f32 %v1145_v53, %v993_v59  ;;  %v493_v19 = vsel %vm419_vm8, %v1929_v34, 0.0  ;;  %v709_v22 = vsel %vm635_vm9, %v1941_v51, 0.0  ;;  %v927_v37 = vsel %vm853_vm10, %v1944_v56, 0.0 }
  0xfe   : > { %v992_v25 = vadd.f32 %v928_v57, %v774_v60  ;;  %v773_v8 = vadd.f32 %v709_v22, %v493_v19  ;;  %vm1069_vm11 = vcmp.eq.s32.totalorder %v349_v17, %v1971_v4  ;;  %vm418_vm12 = vcmp.eq.s32.totalorder %v349_v17, %v1911_v1 }
  0xff   : > { %1287 = vmatprep.subr.mxu0 %v1209_v39  ;;  %v1143_v31 = vsel %vm1069_vm11, %v1954_v16, 0.0  ;;  %v492_v58 = vsel %vm418_vm12, %v1920_v18, 0.0  ;;  %vm634_vm13 = vcmp.eq.s32.totalorder %v349_v17, %v1917_v12  ;;  %vm852_vm14 = vcmp.eq.s32.totalorder %v349_v17, %v1926_v26 }
 0x100   : > { %v1208_v52 = vadd.f32 %v1144_v30, %v992_v25  ;;  %v991_v54 = vadd.f32 %v927_v37, %v773_v8  ;;  %v708_v0 = vsel %vm634_vm13, %v1932_v41, 0.0  ;;  %v926_v44 = vsel %vm852_vm14, %v1938_v42, 0.0  ;;  %v1231_v37 = vld [vmem:[%s1829_s19] sm:$0xff] }
 0x101   : > { %v772_v48 = vadd.f32 %v708_v0, %v492_v58  ;;  %vm1068_vm15 = vcmp.eq.s32.totalorder %v349_v17, %v1968_v3  ;;  %vm417_vm0 = vcmp.eq.s32.totalorder %v2570_v24, %v1914_v55  ;;  %vm633_vm1 = vcmp.eq.s32.totalorder %v2570_v24, %v1923_v23 }
 0x102   : > { %1288 = vmatpush2.msra.mxu0 %v1208_v52  ;;  %v1207_v6 = vadd.f32 %v1143_v31, %v991_v54  ;;  %v1142_v35 = vsel %vm1068_vm15, %v1951_v63, 0.0  ;;  %v491_v7 = vsel %vm417_vm0, %v1929_v34, 0.0  ;;  %v707_v28 = vsel %vm633_vm1, %v1941_v51, 0.0 }
 0x103   : > { %v990_v9 = vadd.f32 %v926_v44, %v772_v48  ;;  %v771_v10 = vadd.f32 %v707_v28, %v491_v7  ;;  %vm851_vm2 = vcmp.eq.s32.totalorder %v2570_v24, %v1935_v49  ;;  %vm1067_vm3 = vcmp.eq.s32.totalorder %v2570_v24, %v1971_v4 }
 0x104   : > { %1289 = vmatprep.subr.mxu0 %v1207_v6  ;;  %v925_v11 = vsel %vm851_vm2, %v1944_v56, 0.0  ;;  %v1141_v5 = vsel %vm1067_vm3, %v1954_v16, 0.0  ;;  %vm416_vm4 = vcmp.eq.s32.totalorder %v2570_v24, %v1911_v1  ;;  %vm632_vm5 = vcmp.eq.s32.totalorder %v2570_v24, %v1917_v12 }
 0x105   : > { %v1206_v29 = vadd.f32 %v1142_v35, %v990_v9  ;;  %v989_v61 = vadd.f32 %v925_v11, %v771_v10  ;;  %v490_v13 = vsel %vm416_vm4, %v1920_v18, 0.0  ;;  %v706_v38 = vsel %vm632_vm5, %v1932_v41, 0.0 }
 0x106   : > { %v770_v45 = vadd.f32 %v706_v38, %v490_v13  ;;  %vm850_vm6 = vcmp.eq.s32.totalorder %v2570_v24, %v1926_v26  ;;  %vm1066_vm7 = vcmp.eq.s32.totalorder %v2570_v24, %v1968_v3  ;;  %vm415_vm8 = vcmp.eq.s32.totalorder %v2573_v32, %v1914_v55 }
 0x107   : > { %1290 = vmatpush2.msra.mxu0 %v1206_v29  ;;  %v1205_v27 = vadd.f32 %v1141_v5, %v989_v61  ;;  %v924_v14 = vsel %vm850_vm6, %v1938_v42, 0.0  ;;  %v1140_v15 = vsel %vm1066_vm7, %v1951_v63, 0.0  ;;  %v489_v17 = vsel %vm415_vm8, %v1929_v34, 0.0 }
 0x108   : > { %v988_v20 = vadd.f32 %v924_v14, %v770_v45  ;;  %vm631_vm9 = vcmp.eq.s32.totalorder %v2573_v32, %v1923_v23  ;;  %vm849_vm10 = vcmp.eq.s32.totalorder %v2573_v32, %v1935_v49  ;;  %vm1065_vm11 = vcmp.eq.s32.totalorder %v2573_v32, %v1971_v4 }
 0x109   : > { %1291 = vmatprep.subr.mxu0 %v1205_v27  ;;  %v705_v24 = vsel %vm631_vm9, %v1941_v51, 0.0  ;;  %v923_v36 = vsel %vm849_vm10, %v1944_v56, 0.0  ;;  %v1139_v40 = vsel %vm1065_vm11, %v1954_v16, 0.0  ;;  %vm414_vm12 = vcmp.eq.s32.totalorder %v2573_v32, %v1911_v1 }
 0x10a   : > { %v1204_v47 = vadd.f32 %v1140_v15, %v988_v20  ;;  %v769_v43 = vadd.f32 %v705_v24, %v489_v17  ;;  %v488_v62 = vsel %vm414_vm12, %v1920_v18, 0.0  ;;  %vm630_vm13 = vcmp.eq.s32.totalorder %v2573_v32, %v1917_v12 }
 0x10b   : > { %v704_v50 = vsel %vm630_vm13, %v1932_v41, 0.0  ;;  %vm848_vm14 = vcmp.eq.s32.totalorder %v2573_v32, %v1926_v26  ;;  %vm1064_vm15 = vcmp.eq.s32.totalorder %v2573_v32, %v1968_v3  ;;  %vm413_vm0 = vcmp.eq.s32.totalorder %v2576_v21, %v1914_v55 }
 0x10c   : > { %1292 = vmatpush2.msra.mxu0 %v1204_v47  ;;  %v987_v53 = vadd.f32 %v923_v36, %v769_v43  ;;  %v768_v33 = vadd.f32 %v704_v50, %v488_v62  ;;  %v922_v59 = vsel %vm848_vm14, %v1938_v42, 0.0  ;;  %v1138_v46 = vsel %vm1064_vm15, %v1951_v63, 0.0 }
 0x10d   : > { %v487_v57 = vsel %vm413_vm0, %v1929_v34, 0.0  ;;  %vm629_vm1 = vcmp.eq.s32.totalorder %v2576_v21, %v1923_v23  ;;  %vm847_vm2 = vcmp.eq.s32.totalorder %v2576_v21, %v1935_v49  ;;  %vm1063_vm3 = vcmp.eq.s32.totalorder %v2576_v21, %v1971_v4 }
 0x10e   : > { %v1203_v32 = vadd.f32 %v1139_v40, %v987_v53  ;;  %v986_v30 = vadd.f32 %v922_v59, %v768_v33  ;;  %v703_v60 = vsel %vm629_vm1, %v1941_v51, 0.0  ;;  %v921_v39 = vsel %vm847_vm2, %v1944_v56, 0.0 }
 0x10f   : > { %v767_v19 = vadd.f32 %v703_v60, %v487_v57  ;;  %v1137_v22 = vsel %vm1063_vm3, %v1954_v16, 0.0  ;;  %vm412_vm4 = vcmp.eq.s32.totalorder %v2576_v21, %v1911_v1  ;;  %vm628_vm5 = vcmp.eq.s32.totalorder %v2576_v21, %v1917_v12 }
 0x110   : > { %1293 = vmatprep.subr.mxu0 %v1203_v32  ;;  %v1202_v25 = vadd.f32 %v1138_v46, %v986_v30  ;;  %v486_v8 = vsel %vm412_vm4, %v1920_v18, 0.0  ;;  %v702_v31 = vsel %vm628_vm5, %v1932_v41, 0.0  ;;  %vm846_vm6 = vcmp.eq.s32.totalorder %v2576_v21, %v1926_v26 }
 0x111   : > { %v985_v58 = vadd.f32 %v921_v39, %v767_v19  ;;  %v766_v52 = vadd.f32 %v702_v31, %v486_v8  ;;  %v920_v54 = vsel %vm846_vm6, %v1938_v42, 0.0  ;;  %vm1062_vm7 = vcmp.eq.s32.totalorder %v2576_v21, %v1968_v3 }
 0x112   : > { %1294 = vmatpush2.msra.mxu0 %v1202_v25  ;;  %v1136_v0 = vsel %vm1062_vm7, %v1951_v63, 0.0  ;;  %v345_v44 = vadd.s32 128, %v1841_v2  ;;  %v1233_v48 = vcombine.high %v1231_v37, %v1231_v37 }
 0x113   : > { %v1201_v6 = vadd.f32 %v1137_v22, %v985_v58  ;;  %v984_v35 = vadd.f32 %v920_v54, %v766_v52 }
 0x114   : > { %vm411_vm8 = vcmp.eq.s32.totalorder %v345_v44, %v1914_v55  ;;  %vm627_vm9 = vcmp.eq.s32.totalorder %v345_v44, %v1923_v23  ;;  %vm845_vm10 = vcmp.eq.s32.totalorder %v345_v44, %v1935_v49  ;;  %vm1061_vm11 = vcmp.eq.s32.totalorder %v345_v44, %v1971_v4  ;;  %1299 = vmatprep.mubr.f32.mxu0 %v1233_v48 }
 0x115   : > { %1295 = vmatprep.subr.mxu0 %v1201_v6  ;;  %v1200_v7 = vadd.f32 %v1136_v0, %v984_v35  ;;  %v485_v21 = vsel %vm411_vm8, %v1929_v34, 0.0  ;;  %v701_v28 = vsel %vm627_vm9, %v1941_v51, 0.0  ;;  %v919_v2 = vsel %vm845_vm10, %v1944_v56, 0.0 }
 0x116   : > { %v765_v9 = vadd.f32 %v701_v28, %v485_v21  ;;  %v1135_v10 = vsel %vm1061_vm11, %v1954_v16, 0.0  ;;  %vm410_vm12 = vcmp.eq.s32.totalorder %v345_v44, %v1911_v1  ;;  %vm626_vm13 = vcmp.eq.s32.totalorder %v345_v44, %v1917_v12 }
 0x117   : > { %1296 = vmatpush2.msra.mxu0 %v1200_v7  ;;  %v484_v55 = vsel %vm410_vm12, %v1920_v18, 0.0  ;;  %v700_v23 = vsel %vm626_vm13, %v1932_v41, 0.0  ;;  %vm844_vm14 = vcmp.eq.s32.totalorder %v345_v44, %v1926_v26  ;;  %vm1060_vm15 = vcmp.eq.s32.totalorder %v345_v44, %v1968_v3 }
 0x118   : > { %v983_v34 = vadd.f32 %v919_v2, %v765_v9  ;;  %v764_v49 = vadd.f32 %v700_v23, %v484_v55  ;;  %v918_v51 = vsel %vm844_vm14, %v1938_v42, 0.0  ;;  %v1134_v56 = vsel %vm1060_vm15, %v1951_v63, 0.0 }
 0x11a   : > { %v1199_v1 = vadd.f32 %v1135_v10, %v983_v34  ;;  %v982_v12 = vadd.f32 %v918_v51, %v764_v49 }
 0x11c   : > { %1297 = vmatprep.subr.mxu0 %v1199_v1  ;;  %v1198_v16 = vadd.f32 %v1134_v56, %v982_v12 }
 0x11e   : > { %1298 = vmatpush2.msra.mxu0 %v1198_v16 }
 0x11f   : > { %1300 = vmatmul.mubr.f32.vlgmr.msra.gmra.mxu0 %v1231_v37 }
 0x1df   : > { %v1301_v18 = vpop.f32.mrf.mxu0 }
 0x1e1   : > { %v1303_v26 = vpop.f32.mrf.mxu0 }
 0x1e2   : > { %v1308_v41 = vcombine.low %v1301_v18, %v1303_v26 }
 0x1e4   : > { %1316 = vst [vmem:[%s226_s26] sm:$0xff] %v1308_v41 }
 0x1e5   : > { %1622 = shalt.err (!%p1619_p6)
}
 0x1e6   : > { %s1623_s6 = scalar_lea.hbm %s1332_s3, 128  ;;  %s1627_s16 = scalar_lea.hbm %s2744_s2, 256 }
 0x1e7   : > { %p1624_p7 = scmp.ne.s32.totalorder %s1332_s3, %s1623_s6  ;;  %p1628_p4 = scmp.lt.s32.totalorder %s1332_s3, %s2744_s2 }
 0x1e8   : > { %p1629_p10 = scmp.lt.s32.totalorder %s1627_s16, %s1623_s6 }
 0x1e9   : > { %p1625_p1 = pnand %p1624_p7, %p1764_p9 }
 0x1ea   : > { %p1630_p8 = por %p1629_p10, %p1628_p4 }
 0x1eb   : > { %p1626_p2 = pneg %p1625_p1 }
 0x1ed   : > { %p1631_p0 = pnand %p1630_p8, %p1626_p2 }
 0x1ef   : > { %1634 = shalt.err (!%p1631_p0)
}
 0x1f0   : > { %1489 = dma.vmem_to_hbm [thread:$0]  (%p1764_p9), %s1335_s27, 128, %s1332_s3, %s1318_s7  }
 0x1f1 PF: > { %s1346_s18 = sand.u32 1, %s1673_s9   ;;  %p2751_p3 = scmp.ge.s32.totalorder %s1693_s14, 2 }
 0x1f2   : > { %s1347_s20 = scalar_lea.sflag [#allocation5], %s1346_s18 }
 0x1f3   : > { %p1499_p13 = pnand %p2751_p3, %p1771_p11 }
 0x1f5   : > { %p1500_p5 = pneg %p1499_p13 }
 0x1f7   : > { %1668 = dma.done.wait (%p1500_p5), %s1347_s20, 128  }
 0x1f8   : > { %1670 = vsyncadd (%p1500_p5), %s1347_s20, 4294967168  ;;  %s21_s14 = sadd.s32 1, %s1693_s14   ;;  %s2752_s9 = smov %s1677_s10 }
 0x1f9   : > { %p18_p12 = scmp.ge.s32.totalorder %s21_s14, 4   ;;  %s2753_s10 = smov %s1681_s11 }
 0x1fa   : > { %s2754_s11 = smov %s1769_s23  ;;  %s2755_s12 = smov %s1689_s13 }
 0x1fb   : > { %s2756_s13 = smov %s2758_s17  ;;  %20 = sbr.rel (!%p18_p12) target bundleno = 8 (0x8), region = 94 }
 0x200   :  { %1352 = vsyncpa [#allocation4], 1 }
 0x201   :  { %1354 = vsyncpa [#allocation4 + $0x1], 1 }
 0x202   :  { %1355 = vsyncpa [#allocation7], 1 }
 0x203   :  { %1357 = vsyncpa [#allocation7 + $0x1], 1 }
 0x204   :  { %1358 = vsyncpa [#allocation5], 1 }
 0x205   :  { %1360 = vsyncpa [#allocation5 + $0x1], 1 }

</bundles_post_ra>
